<compile_context>
chip_gen: v7x
topology: tpu7x:2x2x1
jax: 0.10.0
libtpu: 0.0.40
codegen_flags: <defaults>
</compile_context>

<pallas_src>
import math

import jax
import jax.numpy as jnp
from jax.experimental import pallas as pl
from jax.experimental.pallas import tpu as pltpu


def _vmem_capacity_bytes():
    """Per-TensorCore VMEM capacity; falls back to a v7x-safe 64 MiB."""
    try:
        info = pltpu.get_tpu_info()
        cap = getattr(info, "vmem_capacity_bytes", None)
        if cap:
            return int(cap)
    except Exception:
        pass
    return 64 * 2**20


def _block_footprint_bytes(BB, L, S, d_model, H, dk, dv, act_itemsize, attn_itemsize):
    """Rough per-grid-step VMEM footprint (pipeline double-buffers acts/outputs)."""
    acts = 2 * (BB * L * d_model + 2 * BB * S * d_model) * act_itemsize
    outs = 2 * (BB * L * d_model * act_itemsize + BB * H * L * S * attn_itemsize)
    # per-head f32 intermediates (scores / exp / attn / head output) + f32 out acc
    inter = 4 * BB * L * S * 4 + 3 * BB * L * max(dk, dv) * 4 + BB * L * d_model * 4
    return acts + outs + inter


def _choose_block_batch(B, L, S, d_model, H, dk, dv, act_itemsize, attn_itemsize,
                        vmem_cap):
    """Batch rows per grid step: aim for BB*L ~ 256 rows (fill the MXU M dim),
    keep >= 2 grid steps when possible (both v7x TensorCores get work) and keep
    the per-step footprint comfortably inside VMEM."""
    divisors = [d for d in range(1, B + 1) if B % d == 0]
    fits = [d for d in divisors
            if _block_footprint_bytes(d, L, S, d_model, H, dk, dv,
                                      act_itemsize, attn_itemsize) <= 0.4 * vmem_cap]
    candidates = fits or [1]
    preferred = [d for d in candidates if B // d >= 2] or candidates
    target = max(1, 256 // max(L, 1))
    return min(preferred, key=lambda d: (abs(d - target), d))


def make_attention_layer_kernel(BB, L, S, d_model, n_heads, d_keys, d_values):
    H, dk, dv = n_heads, d_keys, d_values

    def kernel(q_ref, k_ref, v_ref,
               wq_ref, bq_ref, wk_ref, bk_ref, wv_ref, bv_ref,
               wo_ref, bo_ref,
               out_ref, attn_ref):
        # MXU operand dtype follows the activations; the weights were cast to
        # this dtype wrapper-side, so bf16 inputs give true bf16 MXU passes.
        mm_dt = q_ref.dtype

        q2 = q_ref[...].reshape(BB * L, d_model)
        k2 = k_ref[...].reshape(BB * S, d_model)
        v2 = v_ref[...].reshape(BB * S, d_model)

        # f32 accumulator for the output projection (sum over heads); no VMEM
        # scratch and no dv-wide masked column stores.
        out_acc = jnp.zeros((BB * L, d_model), jnp.float32)

        for h in range(H):                              # static unroll over heads
            # Head-major weights: wq_ref[h] is a contiguous (d_model, dk) slab,
            # so no lane-misaligned column slicing of Q/K/V is ever needed.
            # (softmax scale is already folded into wq/bq wrapper-side)
            Qh = (jnp.dot(q2, wq_ref[h], preferred_element_type=jnp.float32)
                  + bq_ref[h]).reshape(BB, L, dk)
            Kh = (jnp.dot(k2, wk_ref[h], preferred_element_type=jnp.float32)
                  + bk_ref[h]).reshape(BB, S, dk)
            Vh = (jnp.dot(v2, wv_ref[h], preferred_element_type=jnp.float32)
                  + bv_ref[h]).reshape(BB, S, dv)

            # cast once per head (no repeated per-operand casts)
            Qc, Kc, Vc = Qh.astype(mm_dt), Kh.astype(mm_dt), Vh.astype(mm_dt)

            # scores, batched over the BB batch rows; no K transpose materialized
            s = jnp.einsum('bld,bsd->bls', Qc, Kc,
                           preferred_element_type=jnp.float32)
            m = jnp.max(s, axis=-1, keepdims=True)
            e = jnp.exp(s - m)
            denom = jnp.sum(e, axis=-1, keepdims=True)
            # reciprocal-multiply of the (BB, L, 1) sum instead of dividing the
            # whole (BB, L, S) tensor; approx=False keeps the returned attention
            # matrix exact.
            A = e * pl.reciprocal(denom, approx=False)

            # single bulk store of this head's attention matrix
            attn_ref[:, h] = A.astype(attn_ref.dtype)

            Oh = jnp.einsum('bls,bsd->bld', A.astype(mm_dt), Vc,
                            preferred_element_type=jnp.float32)      # (BB, L, dv)
            # output projection folded into the head loop: accumulate Oh @ wo[h]
            # instead of concatenating heads (no narrow stores, no scratch).
            out_acc = out_acc + jnp.dot(
                Oh.reshape(BB * L, dv).astype(mm_dt), wo_ref[h],
                preferred_element_type=jnp.float32)

        out = out_acc + bo_ref[...]                    # (1, d_model) broadcast add
        out_ref[...] = out.reshape(BB, L, d_model).astype(out_ref.dtype)

    return kernel


def attention_layer(queries, keys, values, params, n_heads,
                    block_batch=None, attn_dtype=jnp.float32):
    """Pallas implementation of AttentionLayer.forward (attn_mask=None path)."""
    B, L, d_model = queries.shape
    _, S, _ = keys.shape
    H = n_heads
    wq, bq, wk, bk, wv, bv, wo, bo = params
    dk = wq.shape[1] // H
    dv = wv.shape[1] // H
    scale = 1.0 / math.sqrt(dk)

    mm_dt = queries.dtype
    act_itemsize = jnp.dtype(mm_dt).itemsize
    attn_itemsize = jnp.dtype(attn_dtype).itemsize

    # --- wrapper-side weight restructuring (free, outside the kernel) ---
    # head-major weight slabs so the kernel indexes heads on a leading axis,
    # softmax scale folded into the query projection, weights cast to the
    # activation dtype (bf16 activations -> true bf16 MXU passes); biases f32
    # (added after the f32 accumulation).
    wq_h = (wq * scale).reshape(d_model, H, dk).transpose(1, 0, 2).astype(mm_dt)
    wk_h = wk.reshape(d_model, H, dk).transpose(1, 0, 2).astype(mm_dt)
    wv_h = wv.reshape(d_model, H, dv).transpose(1, 0, 2).astype(mm_dt)
    wo_h = wo.reshape(H, dv, d_model).astype(mm_dt)
    bq_h = (bq * scale).reshape(H, 1, dk).astype(jnp.float32)
    bk_h = bk.reshape(H, 1, dk).astype(jnp.float32)
    bv_h = bv.reshape(H, 1, dv).astype(jnp.float32)
    bo_f = bo.reshape(1, d_model).astype(jnp.float32)

    vmem_cap = _vmem_capacity_bytes()
    BB = block_batch or _choose_block_batch(B, L, S, d_model, H, dk, dv,
                                            act_itemsize, attn_itemsize, vmem_cap)
    assert B % BB == 0, "block_batch must divide the batch size"
    grid = (B // BB,)

    kernel = make_attention_layer_kernel(BB, L, S, d_model, H, dk, dv)

    def bcast(shape):
        nd = len(shape)
        # weights/biases: identical block every grid step (kept resident).
        return pl.BlockSpec(shape, lambda b, _nd=nd: (0,) * _nd)

    # Explicit VMEM budget with headroom, capped per-generation at ~85% of the
    # chip's VMEM (64 MiB fallback keeps v7x safe; 128 MiB parts get more room).
    w_bytes = ((wq_h.size + wk_h.size + wv_h.size + wo_h.size) * act_itemsize
               + (bq_h.size + bk_h.size + bv_h.size + bo_f.size) * 4)
    est = (_block_footprint_bytes(BB, L, S, d_model, H, dk, dv,
                                  act_itemsize, attn_itemsize) + 2 * w_bytes)
    vmem_limit = int(min(0.85 * vmem_cap, max(32 * 2**20, 2 * est)))

    out, attn = pl.pallas_call(
        kernel,
        out_shape=(
            jax.ShapeDtypeStruct((B, L, d_model), queries.dtype),
            jax.ShapeDtypeStruct((B, H, L, S), attn_dtype),
        ),
        grid_spec=pltpu.PrefetchScalarGridSpec(
            num_scalar_prefetch=0,
            grid=grid,
            in_specs=[
                pl.BlockSpec((BB, L, d_model), lambda b: (b, 0, 0)),   # queries
                pl.BlockSpec((BB, S, d_model), lambda b: (b, 0, 0)),   # keys
                pl.BlockSpec((BB, S, d_model), lambda b: (b, 0, 0)),   # values
                bcast(wq_h.shape), bcast(bq_h.shape),
                bcast(wk_h.shape), bcast(bk_h.shape),
                bcast(wv_h.shape), bcast(bv_h.shape),
                bcast(wo_h.shape), bcast(bo_f.shape),
            ],
            out_specs=[
                pl.BlockSpec((BB, L, d_model), lambda b: (b, 0, 0)),
                pl.BlockSpec((BB, H, L, S), lambda b: (b, 0, 0, 0)),
            ],
        ),
        compiler_params=pltpu.CompilerParams(
            dimension_semantics=("parallel",),
            vmem_limit_bytes=vmem_limit),
    )(queries, keys, values, wq_h, bq_h, wk_h, bk_h, wv_h, bv_h, wo_h, bo_f)
    return out, attn


def reference_attention_layer(queries, keys, values, params, n_heads):
    """Pure-JAX reference mirroring the PyTorch module (FullAttention inner)."""
    B, L, d_model = queries.shape
    _, S, _ = keys.shape
    H = n_heads
    wq, bq, wk, bk, wv, bv, wo, bo = params
    dk = wq.shape[1] // H
    dv = wv.shape[1] // H

    Q = (queries @ wq + bq).reshape(B, L, H, dk)
    K = (keys @ wk + bk).reshape(B, S, H, dk)
    V = (values @ wv + bv).reshape(B, S, H, dv)
    scale = 1.0 / math.sqrt(dk)
    scores = jnp.einsum("blhe,bshe->bhls", Q, K)
    A = jax.nn.softmax(scale * scores, axis=-1)
    O = jnp.einsum("bhls,bshd->blhd", A, V).reshape(B, L, H * dv)
    return O @ wo + bo, A


if __name__ == "__main__":
    # Small shapes consistent with the module's forward.
    B, L, S = 2, 8, 8
    d_model, n_heads = 32, 4
    d_keys = d_model // n_heads
    d_values = d_model // n_heads

    key = jax.random.PRNGKey(0)
    ks = jax.random.split(key, 11)

    def linear_params(kw, kb, fan_in, fan_out):
        # deterministic init (uniform, a la PyTorch Linear), weight stored (in, out)
        bound = 1.0 / math.sqrt(fan_in)
        w = jax.random.uniform(kw, (fan_in, fan_out), jnp.float32, -bound, bound)
        b = jax.random.uniform(kb, (1, fan_out), jnp.float32, -bound, bound)
        return w, b

    wq, bq = linear_params(ks[0], ks[1], d_model, d_keys * n_heads)
    wk, bk = linear_params(ks[2], ks[3], d_model, d_keys * n_heads)
    wv, bv = linear_params(ks[4], ks[5], d_model, d_values * n_heads)
    wo, bo = linear_params(ks[6], ks[7], d_values * n_heads, d_model)
    params = (wq, bq, wk, bk, wv, bv, wo, bo)

    queries = jax.random.normal(ks[8], (B, L, d_model), jnp.float32)
    keys_in = jax.random.normal(ks[9], (B, S, d_model), jnp.float32)
    values_in = jax.random.normal(ks[10], (B, S, d_model), jnp.float32)

    # TODO(synk): attn_mask / tau / delta are passed through to inner_attention in
    # the PyTorch code; only the unmasked (attn_mask=None) path is implemented.
    out, attn = attention_layer(queries, keys_in, values_in, params, n_heads)
    out = jax.block_until_ready(out)
    attn = jax.block_until_ready(attn)

    ref_out, ref_attn = reference_attention_layer(
        queries, keys_in, values_in, params, n_heads)

    assert out.shape == (B, L, d_model)
    assert attn.shape == (B, n_heads, L, S)
    assert jnp.allclose(out, ref_out, atol=1e-5, rtol=1e-5)
    assert jnp.allclose(attn, ref_attn, atol=1e-5, rtol=1e-5)

    print("KERNEL_OK")
</pallas_src>

<mosaic_0001>
module attributes {stable_mosaic.version = 11 : i64} {
  func.func @kernel(%arg0: i32, %arg1: memref<1x8x32xf32, #tpu.memory_space<vmem>>, %arg2: memref<1x8x32xf32, #tpu.memory_space<vmem>>, %arg3: memref<1x8x32xf32, #tpu.memory_space<vmem>>, %arg4: memref<4x32x8xf32, #tpu.memory_space<vmem>>, %arg5: memref<4x1x8xf32, #tpu.memory_space<vmem>>, %arg6: memref<4x32x8xf32, #tpu.memory_space<vmem>>, %arg7: memref<4x1x8xf32, #tpu.memory_space<vmem>>, %arg8: memref<4x32x8xf32, #tpu.memory_space<vmem>>, %arg9: memref<4x1x8xf32, #tpu.memory_space<vmem>>, %arg10: memref<4x8x32xf32, #tpu.memory_space<vmem>>, %arg11: memref<1x32xf32, #tpu.memory_space<vmem>>, %arg12: memref<1x8x32xf32, #tpu.memory_space<vmem>>, %arg13: memref<1x4x8x8xf32, #tpu.memory_space<vmem>>) attributes {dimension_semantics = [#tpu.dimension_semantics<parallel>], iteration_bounds = array<i64: 2>, scalar_prefetch = 0 : i64, scratch_operands = 0 : i64, tpu.core_type = #tpu.core_type<tc>, window_params = [{transform_indices = @transform_0, window_bounds = array<i64: 1, 8, 32>}, {transform_indices = @transform_1, window_bounds = array<i64: 1, 8, 32>}, {transform_indices = @transform_2, window_bounds = array<i64: 1, 8, 32>}, {pipeline_mode = #tpu.pipeline_mode<synchronous>, transform_indices = @transform_3, window_bounds = array<i64: 4, 32, 8>}, {pipeline_mode = #tpu.pipeline_mode<synchronous>, transform_indices = @transform_4, window_bounds = array<i64: 4, 1, 8>}, {pipeline_mode = #tpu.pipeline_mode<synchronous>, transform_indices = @transform_5, window_bounds = array<i64: 4, 32, 8>}, {pipeline_mode = #tpu.pipeline_mode<synchronous>, transform_indices = @transform_6, window_bounds = array<i64: 4, 1, 8>}, {pipeline_mode = #tpu.pipeline_mode<synchronous>, transform_indices = @transform_7, window_bounds = array<i64: 4, 32, 8>}, {pipeline_mode = #tpu.pipeline_mode<synchronous>, transform_indices = @transform_8, window_bounds = array<i64: 4, 1, 8>}, {pipeline_mode = #tpu.pipeline_mode<synchronous>, transform_indices = @transform_9, window_bounds = array<i64: 4, 8, 32>}, {pipeline_mode = #tpu.pipeline_mode<synchronous>, transform_indices = @transform_10, window_bounds = array<i64: 1, 32>}, {transform_indices = @transform_11, window_bounds = array<i64: 1, 8, 32>}, {transform_indices = @transform_12, window_bounds = array<i64: 1, 4, 8, 8>}]} {
    %c0 = arith.constant 0 : index
    %c0_0 = arith.constant 0 : index
    %c0_1 = arith.constant 0 : index
    %0 = vector.load %arg1[%c0, %c0_0, %c0_1] : memref<1x8x32xf32, #tpu.memory_space<vmem>>, vector<1x8x32xf32>
    %1 = vector.shape_cast %0 : vector<1x8x32xf32> to vector<8x32xf32>
    %c0_2 = arith.constant 0 : index
    %c0_3 = arith.constant 0 : index
    %c0_4 = arith.constant 0 : index
    %2 = vector.load %arg2[%c0_2, %c0_3, %c0_4] : memref<1x8x32xf32, #tpu.memory_space<vmem>>, vector<1x8x32xf32>
    %3 = vector.shape_cast %2 : vector<1x8x32xf32> to vector<8x32xf32>
    %c0_5 = arith.constant 0 : index
    %c0_6 = arith.constant 0 : index
    %c0_7 = arith.constant 0 : index
    %4 = vector.load %arg3[%c0_5, %c0_6, %c0_7] : memref<1x8x32xf32, #tpu.memory_space<vmem>>, vector<1x8x32xf32>
    %5 = vector.shape_cast %4 : vector<1x8x32xf32> to vector<8x32xf32>
    %cst = arith.constant 0.000000e+00 : f32
    %6 = vector.broadcast %cst : f32 to vector<8x32xf32>
    %c0_8 = arith.constant 0 : index
    %c0_9 = arith.constant 0 : index
    %c0_10 = arith.constant 0 : index
    %7 = vector.load %arg4[%c0_8, %c0_9, %c0_10] : memref<4x32x8xf32, #tpu.memory_space<vmem>>, vector<1x32x8xf32>
    %8 = vector.shape_cast %7 : vector<1x32x8xf32> to vector<32x8xf32>
    %cst_11 = arith.constant dense<0.000000e+00> : vector<8x8xf32>
    %9 = tpu.matmul %1, %8, %cst_11 {dimension_numbers = #tpu.dot_dimension_numbers<[1], [0], [0], [1], [0, 0, 1, 1], [], []>} : vector<8x32xf32>, vector<32x8xf32>, vector<8x8xf32> -> vector<8x8xf32>
    %c0_12 = arith.constant 0 : index
    %c0_13 = arith.constant 0 : index
    %c0_14 = arith.constant 0 : index
    %10 = vector.load %arg5[%c0_12, %c0_13, %c0_14] : memref<4x1x8xf32, #tpu.memory_space<vmem>>, vector<1x1x8xf32>
    %11 = vector.shape_cast %10 : vector<1x1x8xf32> to vector<1x8xf32>
    %12 = vector.broadcast %11 : vector<1x8xf32> to vector<8x8xf32>
    %13 = arith.addf %9, %12 : vector<8x8xf32>
    %14 = vector.shape_cast %13 : vector<8x8xf32> to vector<1x8x8xf32>
    %c0_15 = arith.constant 0 : index
    %c0_16 = arith.constant 0 : index
    %c0_17 = arith.constant 0 : index
    %15 = vector.load %arg6[%c0_15, %c0_16, %c0_17] : memref<4x32x8xf32, #tpu.memory_space<vmem>>, vector<1x32x8xf32>
    %16 = vector.shape_cast %15 : vector<1x32x8xf32> to vector<32x8xf32>
    %cst_18 = arith.constant dense<0.000000e+00> : vector<8x8xf32>
    %17 = tpu.matmul %3, %16, %cst_18 {dimension_numbers = #tpu.dot_dimension_numbers<[1], [0], [0], [1], [0, 0, 1, 1], [], []>} : vector<8x32xf32>, vector<32x8xf32>, vector<8x8xf32> -> vector<8x8xf32>
    %c0_19 = arith.constant 0 : index
    %c0_20 = arith.constant 0 : index
    %c0_21 = arith.constant 0 : index
    %18 = vector.load %arg7[%c0_19, %c0_20, %c0_21] : memref<4x1x8xf32, #tpu.memory_space<vmem>>, vector<1x1x8xf32>
    %19 = vector.shape_cast %18 : vector<1x1x8xf32> to vector<1x8xf32>
    %20 = vector.broadcast %19 : vector<1x8xf32> to vector<8x8xf32>
    %21 = arith.addf %17, %20 : vector<8x8xf32>
    %22 = vector.shape_cast %21 : vector<8x8xf32> to vector<1x8x8xf32>
    %c0_22 = arith.constant 0 : index
    %c0_23 = arith.constant 0 : index
    %c0_24 = arith.constant 0 : index
    %23 = vector.load %arg8[%c0_22, %c0_23, %c0_24] : memref<4x32x8xf32, #tpu.memory_space<vmem>>, vector<1x32x8xf32>
    %24 = vector.shape_cast %23 : vector<1x32x8xf32> to vector<32x8xf32>
    %cst_25 = arith.constant dense<0.000000e+00> : vector<8x8xf32>
    %25 = tpu.matmul %5, %24, %cst_25 {dimension_numbers = #tpu.dot_dimension_numbers<[1], [0], [0], [1], [0, 0, 1, 1], [], []>} : vector<8x32xf32>, vector<32x8xf32>, vector<8x8xf32> -> vector<8x8xf32>
    %c0_26 = arith.constant 0 : index
    %c0_27 = arith.constant 0 : index
    %c0_28 = arith.constant 0 : index
    %26 = vector.load %arg9[%c0_26, %c0_27, %c0_28] : memref<4x1x8xf32, #tpu.memory_space<vmem>>, vector<1x1x8xf32>
    %27 = vector.shape_cast %26 : vector<1x1x8xf32> to vector<1x8xf32>
    %28 = vector.broadcast %27 : vector<1x8xf32> to vector<8x8xf32>
    %29 = arith.addf %25, %28 : vector<8x8xf32>
    %30 = vector.shape_cast %29 : vector<8x8xf32> to vector<1x8x8xf32>
    "tpu.trace_start"() <{level = 10 : i32, message = "bld,bsd->bls"}> : () -> ()
    %cst_29 = arith.constant dense<0.000000e+00> : vector<1x8x8xf32>
    %31 = tpu.matmul %14, %22, %cst_29 {dimension_numbers = #tpu.dot_dimension_numbers<[2], [2], [1], [1], [0, 0, 0, 1, 1, 1], [0], [0]>} : vector<1x8x8xf32>, vector<1x8x8xf32>, vector<1x8x8xf32> -> vector<1x8x8xf32>
    "tpu.trace_stop"() : () -> ()
    %cst_30 = arith.constant dense<0xFF800000> : vector<1x8xf32>
    %32 = vector.multi_reduction <maximumf>, %31, %cst_30 [2] : vector<1x8x8xf32> to vector<1x8xf32>
    %33 = vector.shape_cast %32 : vector<1x8xf32> to vector<1x8x1xf32>
    %34 = vector.broadcast %33 : vector<1x8x1xf32> to vector<1x8x8xf32>
    %35 = arith.subf %31, %34 : vector<1x8x8xf32>
    %36 = math.exp %35 : vector<1x8x8xf32>
    %cst_31 = arith.constant dense<0.000000e+00> : vector<1x8xf32>
    %37 = vector.multi_reduction <add>, %36, %cst_31 [2] : vector<1x8x8xf32> to vector<1x8xf32>
    %38 = vector.shape_cast %37 : vector<1x8xf32> to vector<1x8x1xf32>
    %39 = tpu.reciprocal %38 : vector<1x8x1xf32> -> vector<1x8x1xf32>
    %40 = vector.broadcast %39 : vector<1x8x1xf32> to vector<1x8x8xf32>
    %41 = arith.mulf %36, %40 : vector<1x8x8xf32>
    %c0_32 = arith.constant 0 : index
    %c0_33 = arith.constant 0 : index
    %c0_34 = arith.constant 0 : index
    %c0_35 = arith.constant 0 : index
    %42 = vector.load %arg13[%c0_32, %c0_33, %c0_34, %c0_35] : memref<1x4x8x8xf32, #tpu.memory_space<vmem>>, vector<1x1x8x8xf32>
    %43 = vector.shape_cast %42 : vector<1x1x8x8xf32> to vector<1x8x8xf32>
    %44 = vector.shape_cast %41 : vector<1x8x8xf32> to vector<1x1x8x8xf32>
    tpu.vector_store %arg13[%c0_32, %c0_33, %c0_34, %c0_35], %44 {strides = array<i32>} : memref<1x4x8x8xf32, #tpu.memory_space<vmem>>, vector<1x1x8x8xf32>,
    "tpu.trace_start"() <{level = 10 : i32, message = "bls,bsd->bld"}> : () -> ()
    %cst_36 = arith.constant dense<0.000000e+00> : vector<1x8x8xf32>
    %45 = tpu.matmul %41, %30, %cst_36 {dimension_numbers = #tpu.dot_dimension_numbers<[2], [1], [1], [2], [0, 0, 0, 1, 1, 2], [0], [0]>} : vector<1x8x8xf32>, vector<1x8x8xf32>, vector<1x8x8xf32> -> vector<1x8x8xf32>
    "tpu.trace_stop"() : () -> ()
    %46 = vector.shape_cast %45 : vector<1x8x8xf32> to vector<8x8xf32>
    %c0_37 = arith.constant 0 : index
    %c0_38 = arith.constant 0 : index
    %c0_39 = arith.constant 0 : index
    %47 = vector.load %arg10[%c0_37, %c0_38, %c0_39] : memref<4x8x32xf32, #tpu.memory_space<vmem>>, vector<1x8x32xf32>
    %48 = vector.shape_cast %47 : vector<1x8x32xf32> to vector<8x32xf32>
    %cst_40 = arith.constant dense<0.000000e+00> : vector<8x32xf32>
    %49 = tpu.matmul %46, %48, %cst_40 {dimension_numbers = #tpu.dot_dimension_numbers<[1], [0], [0], [1], [0, 0, 1, 1], [], []>} : vector<8x8xf32>, vector<8x32xf32>, vector<8x32xf32> -> vector<8x32xf32>
    %50 = arith.addf %6, %49 : vector<8x32xf32>
    %c1 = arith.constant 1 : index
    %c0_41 = arith.constant 0 : index
    %c0_42 = arith.constant 0 : index
    %51 = vector.load %arg4[%c1, %c0_41, %c0_42] : memref<4x32x8xf32, #tpu.memory_space<vmem>>, vector<1x32x8xf32>
    %52 = vector.shape_cast %51 : vector<1x32x8xf32> to vector<32x8xf32>
    %cst_43 = arith.constant dense<0.000000e+00> : vector<8x8xf32>
    %53 = tpu.matmul %1, %52, %cst_43 {dimension_numbers = #tpu.dot_dimension_numbers<[1], [0], [0], [1], [0, 0, 1, 1], [], []>} : vector<8x32xf32>, vector<32x8xf32>, vector<8x8xf32> -> vector<8x8xf32>
    %c1_44 = arith.constant 1 : index
    %c0_45 = arith.constant 0 : index
    %c0_46 = arith.constant 0 : index
    %54 = vector.load %arg5[%c1_44, %c0_45, %c0_46] : memref<4x1x8xf32, #tpu.memory_space<vmem>>, vector<1x1x8xf32>
    %55 = vector.shape_cast %54 : vector<1x1x8xf32> to vector<1x8xf32>
    %56 = vector.broadcast %55 : vector<1x8xf32> to vector<8x8xf32>
    %57 = arith.addf %53, %56 : vector<8x8xf32>
    %58 = vector.shape_cast %57 : vector<8x8xf32> to vector<1x8x8xf32>
    %c1_47 = arith.constant 1 : index
    %c0_48 = arith.constant 0 : index
    %c0_49 = arith.constant 0 : index
    %59 = vector.load %arg6[%c1_47, %c0_48, %c0_49] : memref<4x32x8xf32, #tpu.memory_space<vmem>>, vector<1x32x8xf32>
    %60 = vector.shape_cast %59 : vector<1x32x8xf32> to vector<32x8xf32>
    %cst_50 = arith.constant dense<0.000000e+00> : vector<8x8xf32>
    %61 = tpu.matmul %3, %60, %cst_50 {dimension_numbers = #tpu.dot_dimension_numbers<[1], [0], [0], [1], [0, 0, 1, 1], [], []>} : vector<8x32xf32>, vector<32x8xf32>, vector<8x8xf32> -> vector<8x8xf32>
    %c1_51 = arith.constant 1 : index
    %c0_52 = arith.constant 0 : index
    %c0_53 = arith.constant 0 : index
    %62 = vector.load %arg7[%c1_51, %c0_52, %c0_53] : memref<4x1x8xf32, #tpu.memory_space<vmem>>, vector<1x1x8xf32>
    %63 = vector.shape_cast %62 : vector<1x1x8xf32> to vector<1x8xf32>
    %64 = vector.broadcast %63 : vector<1x8xf32> to vector<8x8xf32>
    %65 = arith.addf %61, %64 : vector<8x8xf32>
    %66 = vector.shape_cast %65 : vector<8x8xf32> to vector<1x8x8xf32>
    %c1_54 = arith.constant 1 : index
    %c0_55 = arith.constant 0 : index
    %c0_56 = arith.constant 0 : index
    %67 = vector.load %arg8[%c1_54, %c0_55, %c0_56] : memref<4x32x8xf32, #tpu.memory_space<vmem>>, vector<1x32x8xf32>
    %68 = vector.shape_cast %67 : vector<1x32x8xf32> to vector<32x8xf32>
    %cst_57 = arith.constant dense<0.000000e+00> : vector<8x8xf32>
    %69 = tpu.matmul %5, %68, %cst_57 {dimension_numbers = #tpu.dot_dimension_numbers<[1], [0], [0], [1], [0, 0, 1, 1], [], []>} : vector<8x32xf32>, vector<32x8xf32>, vector<8x8xf32> -> vector<8x8xf32>
    %c1_58 = arith.constant 1 : index
    %c0_59 = arith.constant 0 : index
    %c0_60 = arith.constant 0 : index
    %70 = vector.load %arg9[%c1_58, %c0_59, %c0_60] : memref<4x1x8xf32, #tpu.memory_space<vmem>>, vector<1x1x8xf32>
    %71 = vector.shape_cast %70 : vector<1x1x8xf32> to vector<1x8xf32>
    %72 = vector.broadcast %71 : vector<1x8xf32> to vector<8x8xf32>
    %73 = arith.addf %69, %72 : vector<8x8xf32>
    %74 = vector.shape_cast %73 : vector<8x8xf32> to vector<1x8x8xf32>
    "tpu.trace_start"() <{level = 10 : i32, message = "bld,bsd->bls"}> : () -> ()
    %cst_61 = arith.constant dense<0.000000e+00> : vector<1x8x8xf32>
    %75 = tpu.matmul %58, %66, %cst_61 {dimension_numbers = #tpu.dot_dimension_numbers<[2], [2], [1], [1], [0, 0, 0, 1, 1, 1], [0], [0]>} : vector<1x8x8xf32>, vector<1x8x8xf32>, vector<1x8x8xf32> -> vector<1x8x8xf32>
    "tpu.trace_stop"() : () -> ()
    %cst_62 = arith.constant dense<0xFF800000> : vector<1x8xf32>
    %76 = vector.multi_reduction <maximumf>, %75, %cst_62 [2] : vector<1x8x8xf32> to vector<1x8xf32>
    %77 = vector.shape_cast %76 : vector<1x8xf32> to vector<1x8x1xf32>
    %78 = vector.broadcast %77 : vector<1x8x1xf32> to vector<1x8x8xf32>
    %79 = arith.subf %75, %78 : vector<1x8x8xf32>
    %80 = math.exp %79 : vector<1x8x8xf32>
    %cst_63 = arith.constant dense<0.000000e+00> : vector<1x8xf32>
    %81 = vector.multi_reduction <add>, %80, %cst_63 [2] : vector<1x8x8xf32> to vector<1x8xf32>
    %82 = vector.shape_cast %81 : vector<1x8xf32> to vector<1x8x1xf32>
    %83 = tpu.reciprocal %82 : vector<1x8x1xf32> -> vector<1x8x1xf32>
    %84 = vector.broadcast %83 : vector<1x8x1xf32> to vector<1x8x8xf32>
    %85 = arith.mulf %80, %84 : vector<1x8x8xf32>
    %c0_64 = arith.constant 0 : index
    %c1_65 = arith.constant 1 : index
    %c0_66 = arith.constant 0 : index
    %c0_67 = arith.constant 0 : index
    %86 = vector.load %arg13[%c0_64, %c1_65, %c0_66, %c0_67] : memref<1x4x8x8xf32, #tpu.memory_space<vmem>>, vector<1x1x8x8xf32>
    %87 = vector.shape_cast %86 : vector<1x1x8x8xf32> to vector<1x8x8xf32>
    %88 = vector.shape_cast %85 : vector<1x8x8xf32> to vector<1x1x8x8xf32>
    tpu.vector_store %arg13[%c0_64, %c1_65, %c0_66, %c0_67], %88 {strides = array<i32>} : memref<1x4x8x8xf32, #tpu.memory_space<vmem>>, vector<1x1x8x8xf32>,
    "tpu.trace_start"() <{level = 10 : i32, message = "bls,bsd->bld"}> : () -> ()
    %cst_68 = arith.constant dense<0.000000e+00> : vector<1x8x8xf32>
    %89 = tpu.matmul %85, %74, %cst_68 {dimension_numbers = #tpu.dot_dimension_numbers<[2], [1], [1], [2], [0, 0, 0, 1, 1, 2], [0], [0]>} : vector<1x8x8xf32>, vector<1x8x8xf32>, vector<1x8x8xf32> -> vector<1x8x8xf32>
    "tpu.trace_stop"() : () -> ()
    %90 = vector.shape_cast %89 : vector<1x8x8xf32> to vector<8x8xf32>
    %c1_69 = arith.constant 1 : index
    %c0_70 = arith.constant 0 : index
    %c0_71 = arith.constant 0 : index
    %91 = vector.load %arg10[%c1_69, %c0_70, %c0_71] : memref<4x8x32xf32, #tpu.memory_space<vmem>>, vector<1x8x32xf32>
    %92 = vector.shape_cast %91 : vector<1x8x32xf32> to vector<8x32xf32>
    %cst_72 = arith.constant dense<0.000000e+00> : vector<8x32xf32>
    %93 = tpu.matmul %90, %92, %cst_72 {dimension_numbers = #tpu.dot_dimension_numbers<[1], [0], [0], [1], [0, 0, 1, 1], [], []>} : vector<8x8xf32>, vector<8x32xf32>, vector<8x32xf32> -> vector<8x32xf32>
    %94 = arith.addf %50, %93 : vector<8x32xf32>
    %c2 = arith.constant 2 : index
    %c0_73 = arith.constant 0 : index
    %c0_74 = arith.constant 0 : index
    %95 = vector.load %arg4[%c2, %c0_73, %c0_74] : memref<4x32x8xf32, #tpu.memory_space<vmem>>, vector<1x32x8xf32>
    %96 = vector.shape_cast %95 : vector<1x32x8xf32> to vector<32x8xf32>
    %cst_75 = arith.constant dense<0.000000e+00> : vector<8x8xf32>
    %97 = tpu.matmul %1, %96, %cst_75 {dimension_numbers = #tpu.dot_dimension_numbers<[1], [0], [0], [1], [0, 0, 1, 1], [], []>} : vector<8x32xf32>, vector<32x8xf32>, vector<8x8xf32> -> vector<8x8xf32>
    %c2_76 = arith.constant 2 : index
    %c0_77 = arith.constant 0 : index
    %c0_78 = arith.constant 0 : index
    %98 = vector.load %arg5[%c2_76, %c0_77, %c0_78] : memref<4x1x8xf32, #tpu.memory_space<vmem>>, vector<1x1x8xf32>
    %99 = vector.shape_cast %98 : vector<1x1x8xf32> to vector<1x8xf32>
    %100 = vector.broadcast %99 : vector<1x8xf32> to vector<8x8xf32>
    %101 = arith.addf %97, %100 : vector<8x8xf32>
    %102 = vector.shape_cast %101 : vector<8x8xf32> to vector<1x8x8xf32>
    %c2_79 = arith.constant 2 : index
    %c0_80 = arith.constant 0 : index
    %c0_81 = arith.constant 0 : index
    %103 = vector.load %arg6[%c2_79, %c0_80, %c0_81] : memref<4x32x8xf32, #tpu.memory_space<vmem>>, vector<1x32x8xf32>
    %104 = vector.shape_cast %103 : vector<1x32x8xf32> to vector<32x8xf32>
    %cst_82 = arith.constant dense<0.000000e+00> : vector<8x8xf32>
    %105 = tpu.matmul %3, %104, %cst_82 {dimension_numbers = #tpu.dot_dimension_numbers<[1], [0], [0], [1], [0, 0, 1, 1], [], []>} : vector<8x32xf32>, vector<32x8xf32>, vector<8x8xf32> -> vector<8x8xf32>
    %c2_83 = arith.constant 2 : index
    %c0_84 = arith.constant 0 : index
    %c0_85 = arith.constant 0 : index
    %106 = vector.load %arg7[%c2_83, %c0_84, %c0_85] : memref<4x1x8xf32, #tpu.memory_space<vmem>>, vector<1x1x8xf32>
    %107 = vector.shape_cast %106 : vector<1x1x8xf32> to vector<1x8xf32>
    %108 = vector.broadcast %107 : vector<1x8xf32> to vector<8x8xf32>
    %109 = arith.addf %105, %108 : vector<8x8xf32>
    %110 = vector.shape_cast %109 : vector<8x8xf32> to vector<1x8x8xf32>
    %c2_86 = arith.constant 2 : index
    %c0_87 = arith.constant 0 : index
    %c0_88 = arith.constant 0 : index
    %111 = vector.load %arg8[%c2_86, %c0_87, %c0_88] : memref<4x32x8xf32, #tpu.memory_space<vmem>>, vector<1x32x8xf32>
    %112 = vector.shape_cast %111 : vector<1x32x8xf32> to vector<32x8xf32>
    %cst_89 = arith.constant dense<0.000000e+00> : vector<8x8xf32>
    %113 = tpu.matmul %5, %112, %cst_89 {dimension_numbers = #tpu.dot_dimension_numbers<[1], [0], [0], [1], [0, 0, 1, 1], [], []>} : vector<8x32xf32>, vector<32x8xf32>, vector<8x8xf32> -> vector<8x8xf32>
    %c2_90 = arith.constant 2 : index
    %c0_91 = arith.constant 0 : index
    %c0_92 = arith.constant 0 : index
    %114 = vector.load %arg9[%c2_90, %c0_91, %c0_92] : memref<4x1x8xf32, #tpu.memory_space<vmem>>, vector<1x1x8xf32>
    %115 = vector.shape_cast %114 : vector<1x1x8xf32> to vector<1x8xf32>
    %116 = vector.broadcast %115 : vector<1x8xf32> to vector<8x8xf32>
    %117 = arith.addf %113, %116 : vector<8x8xf32>
    %118 = vector.shape_cast %117 : vector<8x8xf32> to vector<1x8x8xf32>
    "tpu.trace_start"() <{level = 10 : i32, message = "bld,bsd->bls"}> : () -> ()
    %cst_93 = arith.constant dense<0.000000e+00> : vector<1x8x8xf32>
    %119 = tpu.matmul %102, %110, %cst_93 {dimension_numbers = #tpu.dot_dimension_numbers<[2], [2], [1], [1], [0, 0, 0, 1, 1, 1], [0], [0]>} : vector<1x8x8xf32>, vector<1x8x8xf32>, vector<1x8x8xf32> -> vector<1x8x8xf32>
    "tpu.trace_stop"() : () -> ()
    %cst_94 = arith.constant dense<0xFF800000> : vector<1x8xf32>
    %120 = vector.multi_reduction <maximumf>, %119, %cst_94 [2] : vector<1x8x8xf32> to vector<1x8xf32>
    %121 = vector.shape_cast %120 : vector<1x8xf32> to vector<1x8x1xf32>
    %122 = vector.broadcast %121 : vector<1x8x1xf32> to vector<1x8x8xf32>
    %123 = arith.subf %119, %122 : vector<1x8x8xf32>
    %124 = math.exp %123 : vector<1x8x8xf32>
    %cst_95 = arith.constant dense<0.000000e+00> : vector<1x8xf32>
    %125 = vector.multi_reduction <add>, %124, %cst_95 [2] : vector<1x8x8xf32> to vector<1x8xf32>
    %126 = vector.shape_cast %125 : vector<1x8xf32> to vector<1x8x1xf32>
    %127 = tpu.reciprocal %126 : vector<1x8x1xf32> -> vector<1x8x1xf32>
    %128 = vector.broadcast %127 : vector<1x8x1xf32> to vector<1x8x8xf32>
    %129 = arith.mulf %124, %128 : vector<1x8x8xf32>
    %c0_96 = arith.constant 0 : index
    %c2_97 = arith.constant 2 : index
    %c0_98 = arith.constant 0 : index
    %c0_99 = arith.constant 0 : index
    %130 = vector.load %arg13[%c0_96, %c2_97, %c0_98, %c0_99] : memref<1x4x8x8xf32, #tpu.memory_space<vmem>>, vector<1x1x8x8xf32>
    %131 = vector.shape_cast %130 : vector<1x1x8x8xf32> to vector<1x8x8xf32>
    %132 = vector.shape_cast %129 : vector<1x8x8xf32> to vector<1x1x8x8xf32>
    tpu.vector_store %arg13[%c0_96, %c2_97, %c0_98, %c0_99], %132 {strides = array<i32>} : memref<1x4x8x8xf32, #tpu.memory_space<vmem>>, vector<1x1x8x8xf32>,
    "tpu.trace_start"() <{level = 10 : i32, message = "bls,bsd->bld"}> : () -> ()
    %cst_100 = arith.constant dense<0.000000e+00> : vector<1x8x8xf32>
    %133 = tpu.matmul %129, %118, %cst_100 {dimension_numbers = #tpu.dot_dimension_numbers<[2], [1], [1], [2], [0, 0, 0, 1, 1, 2], [0], [0]>} : vector<1x8x8xf32>, vector<1x8x8xf32>, vector<1x8x8xf32> -> vector<1x8x8xf32>
    "tpu.trace_stop"() : () -> ()
    %134 = vector.shape_cast %133 : vector<1x8x8xf32> to vector<8x8xf32>
    %c2_101 = arith.constant 2 : index
    %c0_102 = arith.constant 0 : index
    %c0_103 = arith.constant 0 : index
    %135 = vector.load %arg10[%c2_101, %c0_102, %c0_103] : memref<4x8x32xf32, #tpu.memory_space<vmem>>, vector<1x8x32xf32>
    %136 = vector.shape_cast %135 : vector<1x8x32xf32> to vector<8x32xf32>
    %cst_104 = arith.constant dense<0.000000e+00> : vector<8x32xf32>
    %137 = tpu.matmul %134, %136, %cst_104 {dimension_numbers = #tpu.dot_dimension_numbers<[1], [0], [0], [1], [0, 0, 1, 1], [], []>} : vector<8x8xf32>, vector<8x32xf32>, vector<8x32xf32> -> vector<8x32xf32>
    %138 = arith.addf %94, %137 : vector<8x32xf32>
    %c3 = arith.constant 3 : index
    %c0_105 = arith.constant 0 : index
    %c0_106 = arith.constant 0 : index
    %139 = vector.load %arg4[%c3, %c0_105, %c0_106] : memref<4x32x8xf32, #tpu.memory_space<vmem>>, vector<1x32x8xf32>
    %140 = vector.shape_cast %139 : vector<1x32x8xf32> to vector<32x8xf32>
    %cst_107 = arith.constant dense<0.000000e+00> : vector<8x8xf32>
    %141 = tpu.matmul %1, %140, %cst_107 {dimension_numbers = #tpu.dot_dimension_numbers<[1], [0], [0], [1], [0, 0, 1, 1], [], []>} : vector<8x32xf32>, vector<32x8xf32>, vector<8x8xf32> -> vector<8x8xf32>
    %c3_108 = arith.constant 3 : index
    %c0_109 = arith.constant 0 : index
    %c0_110 = arith.constant 0 : index
    %142 = vector.load %arg5[%c3_108, %c0_109, %c0_110] : memref<4x1x8xf32, #tpu.memory_space<vmem>>, vector<1x1x8xf32>
    %143 = vector.shape_cast %142 : vector<1x1x8xf32> to vector<1x8xf32>
    %144 = vector.broadcast %143 : vector<1x8xf32> to vector<8x8xf32>
    %145 = arith.addf %141, %144 : vector<8x8xf32>
    %146 = vector.shape_cast %145 : vector<8x8xf32> to vector<1x8x8xf32>
    %c3_111 = arith.constant 3 : index
    %c0_112 = arith.constant 0 : index
    %c0_113 = arith.constant 0 : index
    %147 = vector.load %arg6[%c3_111, %c0_112, %c0_113] : memref<4x32x8xf32, #tpu.memory_space<vmem>>, vector<1x32x8xf32>
    %148 = vector.shape_cast %147 : vector<1x32x8xf32> to vector<32x8xf32>
    %cst_114 = arith.constant dense<0.000000e+00> : vector<8x8xf32>
    %149 = tpu.matmul %3, %148, %cst_114 {dimension_numbers = #tpu.dot_dimension_numbers<[1], [0], [0], [1], [0, 0, 1, 1], [], []>} : vector<8x32xf32>, vector<32x8xf32>, vector<8x8xf32> -> vector<8x8xf32>
    %c3_115 = arith.constant 3 : index
    %c0_116 = arith.constant 0 : index
    %c0_117 = arith.constant 0 : index
    %150 = vector.load %arg7[%c3_115, %c0_116, %c0_117] : memref<4x1x8xf32, #tpu.memory_space<vmem>>, vector<1x1x8xf32>
    %151 = vector.shape_cast %150 : vector<1x1x8xf32> to vector<1x8xf32>
    %152 = vector.broadcast %151 : vector<1x8xf32> to vector<8x8xf32>
    %153 = arith.addf %149, %152 : vector<8x8xf32>
    %154 = vector.shape_cast %153 : vector<8x8xf32> to vector<1x8x8xf32>
    %c3_118 = arith.constant 3 : index
    %c0_119 = arith.constant 0 : index
    %c0_120 = arith.constant 0 : index
    %155 = vector.load %arg8[%c3_118, %c0_119, %c0_120] : memref<4x32x8xf32, #tpu.memory_space<vmem>>, vector<1x32x8xf32>
    %156 = vector.shape_cast %155 : vector<1x32x8xf32> to vector<32x8xf32>
    %cst_121 = arith.constant dense<0.000000e+00> : vector<8x8xf32>
    %157 = tpu.matmul %5, %156, %cst_121 {dimension_numbers = #tpu.dot_dimension_numbers<[1], [0], [0], [1], [0, 0, 1, 1], [], []>} : vector<8x32xf32>, vector<32x8xf32>, vector<8x8xf32> -> vector<8x8xf32>
    %c3_122 = arith.constant 3 : index
    %c0_123 = arith.constant 0 : index
    %c0_124 = arith.constant 0 : index
    %158 = vector.load %arg9[%c3_122, %c0_123, %c0_124] : memref<4x1x8xf32, #tpu.memory_space<vmem>>, vector<1x1x8xf32>
    %159 = vector.shape_cast %158 : vector<1x1x8xf32> to vector<1x8xf32>
    %160 = vector.broadcast %159 : vector<1x8xf32> to vector<8x8xf32>
    %161 = arith.addf %157, %160 : vector<8x8xf32>
    %162 = vector.shape_cast %161 : vector<8x8xf32> to vector<1x8x8xf32>
    "tpu.trace_start"() <{level = 10 : i32, message = "bld,bsd->bls"}> : () -> ()
    %cst_125 = arith.constant dense<0.000000e+00> : vector<1x8x8xf32>
    %163 = tpu.matmul %146, %154, %cst_125 {dimension_numbers = #tpu.dot_dimension_numbers<[2], [2], [1], [1], [0, 0, 0, 1, 1, 1], [0], [0]>} : vector<1x8x8xf32>, vector<1x8x8xf32>, vector<1x8x8xf32> -> vector<1x8x8xf32>
    "tpu.trace_stop"() : () -> ()
    %cst_126 = arith.constant dense<0xFF800000> : vector<1x8xf32>
    %164 = vector.multi_reduction <maximumf>, %163, %cst_126 [2] : vector<1x8x8xf32> to vector<1x8xf32>
    %165 = vector.shape_cast %164 : vector<1x8xf32> to vector<1x8x1xf32>
    %166 = vector.broadcast %165 : vector<1x8x1xf32> to vector<1x8x8xf32>
    %167 = arith.subf %163, %166 : vector<1x8x8xf32>
    %168 = math.exp %167 : vector<1x8x8xf32>
    %cst_127 = arith.constant dense<0.000000e+00> : vector<1x8xf32>
    %169 = vector.multi_reduction <add>, %168, %cst_127 [2] : vector<1x8x8xf32> to vector<1x8xf32>
    %170 = vector.shape_cast %169 : vector<1x8xf32> to vector<1x8x1xf32>
    %171 = tpu.reciprocal %170 : vector<1x8x1xf32> -> vector<1x8x1xf32>
    %172 = vector.broadcast %171 : vector<1x8x1xf32> to vector<1x8x8xf32>
    %173 = arith.mulf %168, %172 : vector<1x8x8xf32>
    %c0_128 = arith.constant 0 : index
    %c3_129 = arith.constant 3 : index
    %c0_130 = arith.constant 0 : index
    %c0_131 = arith.constant 0 : index
    %174 = vector.load %arg13[%c0_128, %c3_129, %c0_130, %c0_131] : memref<1x4x8x8xf32, #tpu.memory_space<vmem>>, vector<1x1x8x8xf32>
    %175 = vector.shape_cast %174 : vector<1x1x8x8xf32> to vector<1x8x8xf32>
    %176 = vector.shape_cast %173 : vector<1x8x8xf32> to vector<1x1x8x8xf32>
    tpu.vector_store %arg13[%c0_128, %c3_129, %c0_130, %c0_131], %176 {strides = array<i32>} : memref<1x4x8x8xf32, #tpu.memory_space<vmem>>, vector<1x1x8x8xf32>,
    "tpu.trace_start"() <{level = 10 : i32, message = "bls,bsd->bld"}> : () -> ()
    %cst_132 = arith.constant dense<0.000000e+00> : vector<1x8x8xf32>
    %177 = tpu.matmul %173, %162, %cst_132 {dimension_numbers = #tpu.dot_dimension_numbers<[2], [1], [1], [2], [0, 0, 0, 1, 1, 2], [0], [0]>} : vector<1x8x8xf32>, vector<1x8x8xf32>, vector<1x8x8xf32> -> vector<1x8x8xf32>
    "tpu.trace_stop"() : () -> ()
    %178 = vector.shape_cast %177 : vector<1x8x8xf32> to vector<8x8xf32>
    %c3_133 = arith.constant 3 : index
    %c0_134 = arith.constant 0 : index
    %c0_135 = arith.constant 0 : index
    %179 = vector.load %arg10[%c3_133, %c0_134, %c0_135] : memref<4x8x32xf32, #tpu.memory_space<vmem>>, vector<1x8x32xf32>
    %180 = vector.shape_cast %179 : vector<1x8x32xf32> to vector<8x32xf32>
    %cst_136 = arith.constant dense<0.000000e+00> : vector<8x32xf32>
    %181 = tpu.matmul %178, %180, %cst_136 {dimension_numbers = #tpu.dot_dimension_numbers<[1], [0], [0], [1], [0, 0, 1, 1], [], []>} : vector<8x8xf32>, vector<8x32xf32>, vector<8x32xf32> -> vector<8x32xf32>
    %182 = arith.addf %138, %181 : vector<8x32xf32>
    %c0_137 = arith.constant 0 : index
    %c0_138 = arith.constant 0 : index
    %183 = vector.load %arg11[%c0_137, %c0_138] : memref<1x32xf32, #tpu.memory_space<vmem>>, vector<1x32xf32>
    %184 = vector.broadcast %183 : vector<1x32xf32> to vector<8x32xf32>
    %185 = arith.addf %182, %184 : vector<8x32xf32>
    %186 = vector.shape_cast %185 : vector<8x32xf32> to vector<1x8x32xf32>
    %c0_139 = arith.constant 0 : index
    %c0_140 = arith.constant 0 : index
    %c0_141 = arith.constant 0 : index
    %187 = vector.load %arg12[%c0_139, %c0_140, %c0_141] : memref<1x8x32xf32, #tpu.memory_space<vmem>>, vector<1x8x32xf32>
    tpu.vector_store %arg12[%c0_139, %c0_140, %c0_141], %186 {strides = array<i32>} : memref<1x8x32xf32, #tpu.memory_space<vmem>>, vector<1x8x32xf32>,
    return
  }
  func.func @transform_0(%arg0: i32) -> (i32, i32, i32) {
    %c0_i32 = arith.constant 0 : i32
    %c0_i32_0 = arith.constant 0 : i32
    %c0_i32_1 = arith.constant 0 : i32
    return %arg0, %c0_i32, %c0_i32_0 : i32, i32, i32
  }
  func.func @transform_1(%arg0: i32) -> (i32, i32, i32) {
    %c0_i32 = arith.constant 0 : i32
    %c0_i32_0 = arith.constant 0 : i32
    %c0_i32_1 = arith.constant 0 : i32
    return %arg0, %c0_i32, %c0_i32_0 : i32, i32, i32
  }
  func.func @transform_2(%arg0: i32) -> (i32, i32, i32) {
    %c0_i32 = arith.constant 0 : i32
    %c0_i32_0 = arith.constant 0 : i32
    %c0_i32_1 = arith.constant 0 : i32
    return %arg0, %c0_i32, %c0_i32_0 : i32, i32, i32
  }
  func.func @transform_3(%arg0: i32) -> (i32, i32, i32) {
    %c0_i32 = arith.constant 0 : i32
    %c0_i32_0 = arith.constant 0 : i32
    %c0_i32_1 = arith.constant 0 : i32
    %c0_i32_2 = arith.constant 0 : i32
    return %c0_i32, %c0_i32_0, %c0_i32_1 : i32, i32, i32
  }
  func.func @transform_4(%arg0: i32) -> (i32, i32, i32) {
    %c0_i32 = arith.constant 0 : i32
    %c0_i32_0 = arith.constant 0 : i32
    %c0_i32_1 = arith.constant 0 : i32
    %c0_i32_2 = arith.constant 0 : i32
    return %c0_i32, %c0_i32_0, %c0_i32_1 : i32, i32, i32
  }
  func.func @transform_5(%arg0: i32) -> (i32, i32, i32) {
    %c0_i32 = arith.constant 0 : i32
    %c0_i32_0 = arith.constant 0 : i32
    %c0_i32_1 = arith.constant 0 : i32
    %c0_i32_2 = arith.constant 0 : i32
    return %c0_i32, %c0_i32_0, %c0_i32_1 : i32, i32, i32
  }
  func.func @transform_6(%arg0: i32) -> (i32, i32, i32) {
    %c0_i32 = arith.constant 0 : i32
    %c0_i32_0 = arith.constant 0 : i32
    %c0_i32_1 = arith.constant 0 : i32
    %c0_i32_2 = arith.constant 0 : i32
    return %c0_i32, %c0_i32_0, %c0_i32_1 : i32, i32, i32
  }
  func.func @transform_7(%arg0: i32) -> (i32, i32, i32) {
    %c0_i32 = arith.constant 0 : i32
    %c0_i32_0 = arith.constant 0 : i32
    %c0_i32_1 = arith.constant 0 : i32
    %c0_i32_2 = arith.constant 0 : i32
    return %c0_i32, %c0_i32_0, %c0_i32_1 : i32, i32, i32
  }
  func.func @transform_8(%arg0: i32) -> (i32, i32, i32) {
    %c0_i32 = arith.constant 0 : i32
    %c0_i32_0 = arith.constant 0 : i32
    %c0_i32_1 = arith.constant 0 : i32
    %c0_i32_2 = arith.constant 0 : i32
    return %c0_i32, %c0_i32_0, %c0_i32_1 : i32, i32, i32
  }
  func.func @transform_9(%arg0: i32) -> (i32, i32, i32) {
    %c0_i32 = arith.constant 0 : i32
    %c0_i32_0 = arith.constant 0 : i32
    %c0_i32_1 = arith.constant 0 : i32
    %c0_i32_2 = arith.constant 0 : i32
    return %c0_i32, %c0_i32_0, %c0_i32_1 : i32, i32, i32
  }
  func.func @transform_10(%arg0: i32) -> (i32, i32) {
    %c0_i32 = arith.constant 0 : i32
    %c0_i32_0 = arith.constant 0 : i32
    %c0_i32_1 = arith.constant 0 : i32
    return %c0_i32, %c0_i32_0 : i32, i32
  }
  func.func @transform_11(%arg0: i32) -> (i32, i32, i32) {
    %c0_i32 = arith.constant 0 : i32
    %c0_i32_0 = arith.constant 0 : i32
    %c0_i32_1 = arith.constant 0 : i32
    return %arg0, %c0_i32, %c0_i32_0 : i32, i32, i32
  }
  func.func @transform_12(%arg0: i32) -> (i32, i32, i32, i32) {
    %c0_i32 = arith.constant 0 : i32
    %c0_i32_0 = arith.constant 0 : i32
    %c0_i32_1 = arith.constant 0 : i32
    %c0_i32_2 = arith.constant 0 : i32
    return %arg0, %c0_i32, %c0_i32_0, %c0_i32_1 : i32, i32, i32, i32
  }
}

</mosaic_0001>

<bundles_post_ra>
// kernel: tpu_custom_call.1
= control target key start
LH: loop header
LB: loop body
LE: loop exit
PB: predicated region body
PF: predicated region fallthrough
CT: control target
= control target key end

     0   :  { %s3754_s0 = inlined_call_operand.vmem [shape: f32[2,8,32], index: 0, kind: input, shape index: {}]   ;;  %s3755_s1 = inlined_call_operand.vmem [shape: f32[2,8,32], index: 1, kind: input, shape index: {}]   ;;  %s3756_s2 = inlined_call_operand.vmem [shape: f32[2,8,32], index: 2, kind: input, shape index: {}]   ;;  %s3757_s3 = inlined_call_operand.vmem [shape: f32[4,32,8], index: 3, kind: input, shape index: {}]   ;;  %s3758_s4 = inlined_call_operand.vmem [shape: f32[4,1,8], index: 4, kind: input, shape index: {}]   ;;  %s3759_s5 = inlined_call_operand.vmem [shape: f32[4,32,8], index: 5, kind: input, shape index: {}]   ;;  %s3760_s6 = inlined_call_operand.vmem [shape: f32[4,1,8], index: 6, kind: input, shape index: {}]   ;;  %s3761_s7 = inlined_call_operand.vmem [shape: f32[4,32,8], index: 7, kind: input, shape index: {}]   ;;  %s3762_s8 = inlined_call_operand.vmem [shape: f32[4,1,8], index: 8, kind: input, shape index: {}]   ;;  %s3763_s9 = inlined_call_operand.vmem [shape: f32[4,8,32], index: 9, kind: input, shape index: {}]   ;;  %s3764_s10 = inlined_call_operand.vmem [shape: f32[1,32], index: 10, kind: input, shape index: {}]   ;;  %s3765_s11 = inlined_call_operand.hbm [shape: f32[2,8,32], index: 11, kind: output, shape index: {0}]   ;;  %s3766_s12 = inlined_call_operand.hbm [shape: f32[2,4,8,8], index: 12, kind: output, shape index: {1}]  }
   0x1   :  { %3767 = sst [smem:[#allocation9_spill]] %s3754_s0 }
   0x2   :  { %3768 = sst [smem:[#allocation10_spill]] %s3755_s1 }
   0x3   :  { %3769 = sst [smem:[#allocation11_spill]] %s3756_s2 }
   0x4   :  { %3770 = sst [smem:[#allocation12_spill]] %s3757_s3 }
   0x5   :  { %3771 = sst [smem:[#allocation13_spill]] %s3758_s4 }
   0x6   :  { %18 = vsyncpa [#allocation3], 0 }
   0x7   :  { %20 = vsyncpa [#allocation3 + $0x1], 0 }
   0x8   :  { %21 = vsyncpa [#allocation5], 0 }
   0x9   :  { %23 = vsyncpa [#allocation5 + $0x1], 0  ;;  %s3255_s21 = smov 0   ;;  %s3257_s22 = smov 0  }
   0xa   :  { %s3259_s23 = smov 0   ;;  %s3261_s24 = smov 0  }
   0xb LB: > { %s3276_s25 = sadd.s32 4294967295, %s3181_s24   ;;  %s2565_s26 = sadd.s32 4294967294, %s3181_s24   ;;  %s3181_s24 = sphi %s3261_s24, %s3785_s24   ;;  %s3177_s23 = sphi %s3259_s23, %s3784_s23   ;;  %s3173_s22 = sphi %s3257_s22, %s3783_s22   ;;  %s3169_s21 = sphi %s3255_s21, %s3782_s21  }
   0xc   : > { %s3280_s27 = sadd.s32 1, %s3181_s24   ;;  %s282_s28 = sadd.s32 1, %s3177_s23 }
   0xd   : > { %s279_s29 = ssub.s32 %s3181_s24, %s3280_s27  ;;  %p292_p0 = scmp.ne.s32.totalorder %s3177_s23, %s3173_s22 }
   0xe   : > { %p280_p1 = scmp.eq.s32.totalorder %s279_s29, 0  ;;  %p293_p2 = scmp.eq.s32.totalorder %s3276_s25, 1 }
   0xf   : > { %p298_p3 = scmp.ne.s32.totalorder %s3173_s22, %s3169_s21  ;;  %p299_p4 = scmp.eq.s32.totalorder %s2565_s26, 1 }
  0x10   : > { %s3291_s30 = scalar_select %p280_p1, %s3177_s23, %s282_s28  }
  0x11   : > { %p3293_p5 = por %p293_p2, %p292_p0  ;;  %p3297_p6 = por %p299_p4, %p298_p3 }
  0x12   : > { %3772 = sst [smem:[#allocation8_spill]] %s3291_s30  ;;  %p2568_p7 = scmp.ge.s32.totalorder %s3181_s24, 1 }
  0x13   : > { %p388_p8 = scmp.lt.s32.totalorder %s3181_s24, 3 }
  0x15   : > { %p389_p9 = pnand %p2568_p7, %p388_p8 }
  0x16   : > { %v542_v0 = vld [vmem:[%s3759_s5] sm:$0xff] (!%p389_p9)  ;;  %v543_v1 = vld [vmem:[%s3759_s5 + $0x8] sm:$0xff] (!%p389_p9)  ;;  %s3775_s3 = sld [smem:[#allocation12_spill]] (!%p389_p9)  ;;  %v3183_v3 = vmov (!%p389_p9), 0.0|0.0   ;;  %v544_v6 = vld [vmem:[%s3759_s5 + $0x10] sm:$0xff] (!%p389_p9)  ;;  %p442_p10 = scmp.lt.s32.totalorder (!%p389_p9), %s3276_s25, 1 }
  0x17   : > { %392 = sbr.rel (%p389_p9) target bundleno = 3894 (0xf36), region = 64  ;;  %2956 = vmatprep.subr.bf16.mxu1 (!%p389_p9), %v3183_v3  ;;  %v2957_v4 = vpack.c.bf16 (!%p389_p9), %v543_v1, %v542_v0  ;;  %2950 = vmatprep.subr.bf16.mxu0 (!%p389_p9), %v3183_v3  ;;  %v545_v7 = vld [vmem:[%s3759_s5 + $0x18] sm:$0xff] (!%p389_p9)  ;;  %vm3184_vm0 = vmmov (!%p389_p9), 0   ;;  %v3185_v11 = vmov (!%p389_p9), 0.0   ;;  %s3776_s1 = sld [smem:[#allocation10_spill]] (!%p389_p9)  ;;  %vm468_vm1 = vcmask (!%p389_p9), 261120  }
  0x18   : > { %2777 = vmatprep.mubr.msk.f32.mxu1 (!%p389_p9), %vm3184_vm0, %v3185_v11  ;;  %2766 = vmatprep.mubr.msk.f32.mxu0 (!%p389_p9), %vm3184_vm0, %v3185_v11  ;;  %v2960_v12 = vpack.c.bf16 (!%p389_p9), %v545_v7, %v544_v6  ;;  %s3777_s0 = sld [smem:[#allocation9_spill]] (!%p389_p9)  ;;  %v2576_v16 = vld [vmem:[%s3760_s6] ss:$0 sm:$0xff] (!%p389_p9)  ;;  %s3778_s4 = sld [smem:[#allocation13_spill]] (!%p389_p9)  ;;  %vm710_vm2 = vcmask (!%p389_p9), 64512   ;;  %v627_v25 = vld [vmem:[%s3761_s7 + $0x8] sm:$0xff] (!%p389_p9) }
  0x19   : > { %2958 = vmatpush3.bf16.msra.mxu1 (!%p389_p9), %v2957_v4  ;;  %v626_v24 = vld [vmem:[%s3761_s7] sm:$0xff] (!%p389_p9)  ;;  %v628_v26 = vld [vmem:[%s3761_s7 + $0x10] sm:$0xff] (!%p389_p9)  ;;  %v629_v28 = vld [vmem:[%s3761_s7 + $0x18] sm:$0xff] (!%p389_p9)  ;;  %s3779_s2 = sld [smem:[#allocation11_spill]] (!%p389_p9) }
  0x1a   : > { %2959 = vmatprep.subr.bf16.mxu1 (!%p389_p9), %v3183_v3  ;;  %v2963_v27 = vpack.c.bf16 (!%p389_p9), %v627_v25, %v626_v24  ;;  %v2966_v29 = vpack.c.bf16 (!%p389_p9), %v629_v28, %v628_v26  ;;  %v2578_v40 = vld [vmem:[%s3762_s8] ss:$0 sm:$0xff] (!%p389_p9)  ;;  %v2591_v51 = vld [vmem:[%s3759_s5 + $0x28] sm:$0xff] (!%p389_p9)  ;;  %v2592_v55 = vld [vmem:[%s3759_s5 + $0x30] sm:$0xff] (!%p389_p9) }
  0x1b   : > { %v2590_v50 = vld [vmem:[%s3759_s5 + $0x20] sm:$0xff] (!%p389_p9)  ;;  %v2593_v56 = vld [vmem:[%s3759_s5 + $0x38] sm:$0xff] (!%p389_p9)  ;;  %v2598_v6 = vld [vmem:[%s3761_s7 + $0x28] sm:$0xff] (!%p389_p9) }
  0x1c   : > { %v457_v2 = vld [vmem:[%s3775_s3] sm:$0xff] (!%p389_p9)  ;;  %v458_v5 = vld [vmem:[%s3775_s3 + $0x8] sm:$0xff] (!%p389_p9)  ;;  %v459_v9 = vld [vmem:[%s3775_s3 + $0x10] sm:$0xff] (!%p389_p9)  ;;  %v2975_v53 = vpack.c.bf16 (!%p389_p9), %v2591_v51, %v2590_v50  ;;  %v2978_v57 = vpack.c.bf16 (!%p389_p9), %v2593_v56, %v2592_v55 }
  0x1d   : > { %v2951_v8 = vpack.c.bf16 (!%p389_p9), %v458_v5, %v457_v2  ;;  %v460_v10 = vld [vmem:[%s3775_s3 + $0x18] sm:$0xff] (!%p389_p9)  ;;  %2961 = vmatpush3.bf16.msra.mxu1 (!%p389_p9), %v2960_v12  ;;  %v2583_v43 = vld [vmem:[%s3775_s3 + $0x20] sm:$0xff] (!%p389_p9)  ;;  %v2584_v44 = vld [vmem:[%s3775_s3 + $0x28] sm:$0xff] (!%p389_p9) }
  0x1e   : > { %s443_s26 = scalar_select %p442_p10, %s3276_s25, 1  ;;  %v2954_v13 = vpack.c.bf16 %v460_v10, %v459_v9  ;;  %2791 = vmatprep.subr.mxu1 %v3185_v11  ;;  %v2574_v17 = vld [vmem:[%s3778_s4] ss:$0 sm:$0xff]  ;;  %v2969_v45 = vpack.c.bf16 %v2584_v44, %v2583_v43  ;;  %v2585_v46 = vld [vmem:[%s3775_s3 + $0x30] sm:$0xff]  ;;  %v2586_v47 = vld [vmem:[%s3775_s3 + $0x38] sm:$0xff] }
  0x1f   : > { %2952 = vmatpush3.bf16.msra.mxu0 %v2951_v8  ;;  %v2972_v48 = vpack.c.bf16 %v2586_v47, %v2585_v46  ;;  %v2595_v62 = vld [vmem:[%s3760_s6 + $0x1] ss:$0 sm:$0xff]  ;;  %v2599_v7 = vld [vmem:[%s3761_s7 + $0x30] sm:$0xff]  ;;  %v2600_v9 = vld [vmem:[%s3761_s7 + $0x38] sm:$0xff] }
  0x20   : > { %2953 = vmatprep.subr.bf16.mxu0 %v3183_v3  ;;  %s3337_s28 = sshll.u32 %s443_s26, 3  ;;  %v2588_v63 = vld [vmem:[%s3778_s4 + $0x1] ss:$0 sm:$0xff]  ;;  %v2984_v10 = vpack.c.bf16 %v2600_v9, %v2599_v7  ;;  %v2608_v26 = vld [vmem:[%s3763_s9 + $0x8] sm:$0xff]  ;;  %v2616_v55 = vld [vmem:[%s3778_s4 + $0x2] ss:$0 sm:$0xff] }
  0x21   : > { %s449_s15 = scalar_lea.vmem %s3776_s1, %s3337_s28  ;;  %s445_s18 = scalar_lea.vmem %s3777_s0, %s3337_s28  ;;  %v2597_v5 = vld [vmem:[%s3761_s7 + $0x20] sm:$0xff] }
  0x22   : > { %v3347_v14 = vld [vmem:[%s449_s15] sm:$0xff]  ;;  %s453_s15 = scalar_lea.vmem %s3779_s2, %s3337_s28  ;;  %s3421_s28 = sand.u32 1, %s3173_s22   ;;  %v2981_v8 = vpack.c.bf16 %v2598_v6, %v2597_v5 }
  0x23   : > { %2955 = vmatpush3.bf16.msra.mxu0 %v2954_v13  ;;  %v3349_v15 = vld [vmem:[%s445_s18] sm:$0xff]  ;;  %2778 = vmatmul.mubr.msk.f32.vlgmr.msra.gmra.mrb[0].mxu1 %vm468_vm1, %v3347_v14  ;;  %s2570_s20 = sshll.u32 %s3421_s28, 5  ;;  %s3186_s18 = smov [#allocation4]  }
  0x24   : > { %2962 = vmatprep.subr.bf16.mxu0 %v3183_v3  ;;  %2793 = vmatprep.mubr.msk.f32.mxu1 %vm3184_vm0, %v3185_v11  ;;  %v3389_v30 = vld [vmem:[%s453_s15] sm:$0xff]  ;;  %s3437_s16 = scalar_lea.vmem [#allocation4], %s2570_s20  ;;  %s2673_s20 = sshll.u32 %s3276_s25, 9 }
  0x25   : > { %s2447_s19 = sshll.u32 %s3437_s16, 4  ;;  %s3675_s29 = scalar_lea.hbm %s3766_s12, %s2673_s20  ;;  %s3670_s19 = int_to_ptr.vmem [resolvable:$true] %s2447_s19 }
  0x26   : > { %2767 = vmatmul.mubr.msk.f32.vlgmr.msra.gmra.mrb[0].mxu0 %vm468_vm1, %v3349_v15  ;;  %s3087_s17 = scalar_lea.vmem %s3670_s19, 512  ;;  %s3091_s0 = sshll.u32 %s3186_s18, 4  ;;  %s3092_s0 = int_to_ptr.vmem [resolvable:$false] %s3091_s0 }
  0x27   : > { %2788 = vmatprep.mubr.msk.f32.mxu0 %vm3184_vm0, %v3185_v11  ;;  %2964 = vmatpush3.bf16.msra.mxu0 %v2963_v27  ;;  %p3088_p11 = scmp.ne.s32.totalorder %s3670_s19, %s3087_s17  ;;  %p3094_p0 = scmp.lt.s32.totalorder %s3670_s19, %s3092_s0 }
  0x28   : > { %2965 = vmatprep.subr.bf16.mxu0 %v3183_v3 }
  0x29   : > { %p3089_p12 = pnand %p3088_p11, %p3293_p5 }
  0x2b   : > { %2967 = vmatpush3.bf16.msra.mxu0 %v2966_v29  ;;  %p3090_p13 = pneg %p3089_p12 }
  0x2c   : > { %2968 = vmatprep.subr.bf16.mxu0 %v3183_v3 }
  0x2e   : > { %2789 = vmatmul.mubr.msk.f32.vlgmr.msra.gmra.mrb[2].mxu0 %vm468_vm1, %v3389_v30 }
  0x2f   : > { %2809 = vmatprep.mubr.msk.f32.mxu0 %vm3184_vm0, %v3185_v11  ;;  %2970 = vmatpush3.bf16.msra.mxu0 %v2969_v45 }
  0x30   : > { %2971 = vmatprep.subr.bf16.mxu0 %v3183_v3 }
  0x33   : > { %2973 = vmatpush3.bf16.msra.mxu0 %v2972_v48  ;;  %v2623_v48 = vld [vmem:[%s3760_s6 + $0x2] ss:$0 sm:$0xff] }
  0x34   : > { %2980 = vmatprep.subr.bf16.mxu0 %v3183_v3 }
  0x36   : > { %2810 = vmatmul.mubr.msk.f32.vlgmr.msra.gmra.mrb[4].mxu0 %vm468_vm1, %v3349_v15 }
  0x37   : > { %2831 = vmatprep.mubr.msk.f32.mxu0 %vm3184_vm0, %v3185_v11  ;;  %2982 = vmatpush3.bf16.msra.mxu0 %v2981_v8 }
  0x38   : > { %2983 = vmatprep.subr.bf16.mxu0 %v3183_v3 }
  0x3b   : > { %2985 = vmatpush3.bf16.msra.mxu0 %v2984_v10 }
  0x3c   : > { %2844 = vmatprep.subr.mxu0 %v3185_v11 }
  0x3e   : > { %2832 = vmatmul.mubr.msk.f32.vlgmr.msra.gmra.mrb[6].mxu0 %vm468_vm1, %v3389_v30 }
  0x3f   : > { %2846 = vmatprep.mubr.msk.f32.mxu0 %vm3184_vm0, %v3185_v11  ;;  %2845 = vmatpush3.msra.mxu0 %v2608_v26 }
  0x40   : > { %2986 = vmatprep.subr.bf16.mxu0 %v3183_v3 }
  0xf6   : > { %v622_v18 = vpop.f32.mrb[0].mxu1 }
  0xf7   : > { %v623_v19 = vadd.f32 %v2576_v16, %v622_v18  ;;  %v2779_v20 = vpop.f32.mrb[1].mxu1 }
  0xf9   : > { %v538_v21 = vpop.f32.mrb[0].mxu0  ;;  %2792 = vmatpush3.xpose.msk.msra.mxu1 %vm710_vm2, %v623_v19 }
  0xfa   : > { %v539_v22 = vadd.f32 %v2574_v17, %v538_v21  ;;  %v2768_v23 = vpop.f32.mrb[1].mxu0  ;;  %2796 = vmatprep.subr.mxu1 %v3185_v11 }
  0xfb   : > { %v2602_v23 = vld [vmem:[%s3762_s8 + $0x1] ss:$0 sm:$0xff] }
  0xfc   : > { %2794 = vmatmul.mubr.msk.f32.vlgmr.msra.gmra.mrb[2].mxu1 %vm710_vm2, %v539_v22 }
  0xfd   : > { %2798 = vmatprep.mubr.msk.f32.mxu1 %vm3184_vm0, %v3185_v11 }
 0x101   : > { %v706_v39 = vpop.f32.mrb[2].mxu0 }
 0x102   : > { %v2790_v41 = vpop.f32.mrb[3].mxu0  ;;  %v707_v42 = vadd.f32 %v2578_v40, %v706_v39  ;;  %v2612_v39 = vld [vmem:[%s3775_s3 + $0x48] sm:$0xff] }
 0x103   : > { %v2613_v41 = vld [vmem:[%s3775_s3 + $0x50] sm:$0xff] }
 0x104   : > { %2797 = vmatpush3.msra.mxu1 %v707_v42  ;;  %v2614_v42 = vld [vmem:[%s3775_s3 + $0x58] sm:$0xff] }
 0x105   : > { %2974 = vmatprep.subr.bf16.mxu1 %v3183_v3  ;;  %v2990_v45 = vpack.c.bf16 %v2614_v42, %v2613_v41  ;;  %v2643_v41 = vld [vmem:[%s3778_s4 + $0x3] ss:$0 sm:$0xff] }
 0x109   : > { %v952_v58 = vpop.f32.mrb[4].mxu0 }
 0x10a   : > { %v2811_v59 = vpop.f32.mrb[5].mxu0  ;;  %v953_v4 = vadd.f32 %v2588_v63, %v952_v58  ;;  %v2628_v63 = vld [vmem:[%s3761_s7 + $0x58] sm:$0xff] }
 0x10b   : > { %v2625_v59 = vld [vmem:[%s3761_s7 + $0x40] sm:$0xff] }
 0x111   : > { %v1118_v22 = vpop.f32.mrb[6].mxu0 }
 0x112   : > { %v2833_v24 = vpop.f32.mrb[7].mxu0  ;;  %v1119_v25 = vadd.f32 %v2602_v23, %v1118_v22  ;;  %v2639_v22 = vld [vmem:[%s3775_s3 + $0x68] sm:$0xff] }
 0x113   : > { %v2640_v24 = vld [vmem:[%s3775_s3 + $0x70] sm:$0xff] }
 0x1cf   : > { %v783_v31 = vpop.f32.mrb[2].mxu1 }
 0x1d0   : > { %v2795_v32 = vpop.f32.mrb[3].mxu1  ;;  %v787_v33 = vsel %vm710_vm2, %v783_v31, -inf }
 0x1d1   : > { %788 = vmax.xlane.f32.xlu0 %v787_v33  ;;  %v2618_v32 = vld [vmem:[%s3759_s5 + $0x40] sm:$0xff]  ;;  %v2619_v33 = vld [vmem:[%s3759_s5 + $0x48] sm:$0xff] }
 0x25e   : > { %v789_v34 = vpop.xlane.xlu0 %788 }
 0x25f   : > { %v790_v35 = vsub.f32 %v783_v31, %v789_v34  ;;  %v872_v31 = vld [vmem:[%s3763_s9] sm:$0xff]  ;;  %v2993_v34 = vpack.c.bf16 %v2619_v33, %v2618_v32 }
 0x261   : > { %v791_v36 = vmul.f32 1.442695, %v790_v35  ;;  %v2620_v35 = vld [vmem:[%s3759_s5 + $0x50] sm:$0xff] }
 0x263   : > { %3071 = vpow2.f32 %v791_v36  ;;  %v2621_v36 = vld [vmem:[%s3759_s5 + $0x58] sm:$0xff] }
 0x26d   : > { %v3072_v37 = vpop.eup %3071 }
 0x26e   : > { %v793_v38 = vsel %vm710_vm2, %v3072_v37, 0.0 }
 0x26f   : > { %794 = vadd.xlane.f32.xlu0 %v793_v38  ;;  %v2611_v38 = vld [vmem:[%s3775_s3 + $0x40] sm:$0xff] }
 0x270   : > { %v2987_v40 = vpack.c.bf16 %v2612_v39, %v2611_v38 }
 0x2fc   : > { %v795_v49 = vpop.xlane.xlu0 %794 }
 0x2fd   : > { %3073 = vrcp.f32 %v795_v49 }
 0x307   : > { %v3074_v52 = vpop.eup %3073 }
 0x308   : > { %v797_v54 = vmul.f32 %v3074_v52, %v3072_v37  ;;  %v2996_v37 = vpack.c.bf16 %v2621_v36, %v2620_v35 }
 0x30a   : > { %2799 = vmatmul.mubr.msk.f32.vlgmr.msra.gmra.mrb[4].mxu1 %vm710_vm2, %v797_v54  ;;  %798 = vst.msk [vmem:[%s3437_s16] sm:$0xff] %vm710_vm2, %v797_v54 }
 0x30b   : > { %2976 = vmatpush3.bf16.msra.mxu1 %v2975_v53  ;;  %2820 = vmatprep.mubr.msk.f32.mxu1 %vm3184_vm0, %v3185_v11 }
 0x30c   : > { %2977 = vmatprep.subr.bf16.mxu1 %v3183_v3 }
 0x30f   : > { %2979 = vmatpush3.bf16.msra.mxu1 %v2978_v57 }
 0x310   : > { %2834 = vmatprep.subr.mxu1 %v3185_v11 }
 0x312   : > { %2821 = vmatmul.mubr.msk.f32.vlgmr.msra.gmra.mrb[6].mxu1 %vm468_vm1, %v3347_v14 }
 0x313   : > { %2836 = vmatprep.mubr.msk.f32.mxu1 %vm3184_vm0, %v3185_v11 }
 0x3dd   : > { %v868_v60 = vpop.f32.mrb[4].mxu1 }
 0x3de   : > { %v2800_v61 = vpop.f32.mrb[5].mxu1 }
 0x3df   : > { %v2627_v61 = vld [vmem:[%s3761_s7 + $0x50] sm:$0xff] }
 0x3e5   : > { %v1035_v0 = vpop.f32.mrb[6].mxu1 }
 0x3e6   : > { %v1036_v1 = vadd.f32 %v2595_v62, %v1035_v0  ;;  %v2822_v2 = vpop.f32.mrb[7].mxu1  ;;  %v3002_v0 = vpack.c.bf16 %v2628_v63, %v2627_v61 }
 0x3e8   : > { %2835 = vmatpush3.xpose.msk.msra.mxu1 %vm710_vm2, %v1036_v1 }
 0x3e9   : > { %2839 = vmatprep.subr.mxu1 %v3185_v11 }
 0x3eb   : > { %2837 = vmatmul.mubr.msk.f32.vlgmr.msra.gmra.mrb[8].mxu1 %vm710_vm2, %v953_v4 }
 0x3ec   : > { %2841 = vmatprep.mubr.msk.f32.mxu1 %vm3184_vm0, %v3185_v11  ;;  %2840 = vmatpush3.msra.mxu1 %v1119_v25  ;;  %v2641_v25 = vld [vmem:[%s3775_s3 + $0x78] sm:$0xff] }
 0x3ed   : > { %2849 = vmatprep.subr.mxu1 %v3185_v11  ;;  %v3008_v26 = vpack.c.bf16 %v2641_v25, %v2640_v24 }
 0x4be   : > { %v1194_v12 = vpop.f32.mrb[8].mxu1 }
 0x4bf   : > { %v2838_v13 = vpop.f32.mrb[9].mxu1  ;;  %v1198_v16 = vsel %vm710_vm2, %v1194_v12, -inf }
 0x4c0   : > { %1199 = vmax.xlane.f32.xlu1 %v1198_v16 }
 0x54d   : > { %v1200_v17 = vpop.xlane.xlu1 %1199 }
 0x54e   : > { %v1201_v18 = vsub.f32 %v1194_v12, %v1200_v17  ;;  %v2630_v12 = vld [vmem:[%s3762_s8 + $0x2] ss:$0 sm:$0xff]  ;;  %v2636_v17 = vld [vmem:[%s3763_s9 + $0x10] sm:$0xff] }
 0x550   : > { %v1202_v19 = vmul.f32 1.442695, %v1201_v18 }
 0x552   : > { %3075 = vpow2.f32 %v1202_v19 }
 0x55c   : > { %v3076_v20 = vpop.eup %3075 }
 0x55d   : > { %v1204_v21 = vsel %vm710_vm2, %v3076_v20, 0.0 }
 0x55e   : > { %1205 = vadd.xlane.f32.xlu1 %v1204_v21  ;;  %v2638_v21 = vld [vmem:[%s3775_s3 + $0x60] sm:$0xff] }
 0x55f   : > { %v3005_v23 = vpack.c.bf16 %v2639_v22, %v2638_v21 }
 0x5eb   : > { %v1206_v27 = vpop.xlane.xlu1 %1205 }
 0x5ec   : > { %3077 = vrcp.f32 %v1206_v27  ;;  %v2645_v27 = vld [vmem:[%s3759_s5 + $0x60] sm:$0xff] }
 0x5f6   : > { %v3078_v28 = vpop.eup %3077 }
 0x5f7   : > { %v1208_v29 = vmul.f32 %v3078_v28, %v3076_v20  ;;  %v2646_v28 = vld [vmem:[%s3759_s5 + $0x68] sm:$0xff] }
 0x5f9   : > { %2842 = vmatmul.mubr.msk.f32.vlgmr.msra.gmra.mrb[10].mxu1 %vm710_vm2, %v1208_v29  ;;  %2606 = vst.msk [vmem:[%s3437_s16 + $0x8] sm:$0xff] %vm710_vm2, %v1208_v29  ;;  %v3011_v29 = vpack.c.bf16 %v2646_v28, %v2645_v27 }
 0x5fa   : > { %2850 = vmatpush3.msra.mxu1 %v872_v31  ;;  %2851 = vmatprep.mubr.msk.f32.mxu1 %vm3184_vm0, %v3185_v11  ;;  %v2647_v31 = vld [vmem:[%s3759_s5 + $0x70] sm:$0xff] }
 0x5fb   : > { %2992 = vmatprep.subr.bf16.mxu1 %v3183_v3 }
 0x5fd   : > { %2852 = vmatmul.mubr.msk.f32.vlgmr.msra.gmra.mrb[12].mxu1 %vm710_vm2, %v868_v60  ;;  %v2626_v60 = vld [vmem:[%s3761_s7 + $0x48] sm:$0xff] }
 0x5fe   : > { %2994 = vmatpush3.bf16.msra.mxu1 %v2993_v34  ;;  %2873 = vmatprep.mubr.msk.f32.mxu1 %vm3184_vm0, %v3185_v11  ;;  %v2999_v62 = vpack.c.bf16 %v2626_v60, %v2625_v59  ;;  %v2663_v60 = vld [vmem:[%s3763_s9 + $0x18] sm:$0xff] }
 0x5ff   : > { %2995 = vmatprep.subr.bf16.mxu1 %v3183_v3 }
 0x602   : > { %2997 = vmatpush3.bf16.msra.mxu1 %v2996_v37 }
 0x603   : > { %2887 = vmatprep.subr.mxu1 %v3185_v11 }
 0x605   : > { %2874 = vmatmul.mubr.msk.f32.vlgmr.msra.gmra.mrb[14].mxu1 %vm468_vm1, %v3347_v14 }
 0x606   : > { %2889 = vmatprep.mubr.msk.f32.mxu1 %vm3184_vm0, %v3185_v11 }
 0x6cc   : > { %v1280_v43 = vpop.f32.mrb[10].mxu1 }
 0x6cd   : > { %v2843_v44 = vpop.f32.mrb[11].mxu1  ;;  %2847 = vmatmul.mubr.msk.f32.vlgmr.msra.gmra.mrb[8].mxu0 %vm710_vm2, %v1280_v43 }
 0x6ce   : > { %2988 = vmatpush3.bf16.msra.mxu0 %v2987_v40  ;;  %2862 = vmatprep.mubr.msk.f32.mxu0 %vm3184_vm0, %v3185_v11  ;;  %v2650_v40 = vld [vmem:[%s3760_s6 + $0x3] ss:$0 sm:$0xff] }
 0x6cf   : > { %2989 = vmatprep.subr.bf16.mxu0 %v3183_v3 }
 0x6d0   : > { %v1428_v46 = vpop.f32.mrb[12].mxu1 }
 0x6d1   : > { %v2853_v47 = vpop.f32.mrb[13].mxu1 }
 0x6d2   : > { %2991 = vmatpush3.bf16.msra.mxu0 %v2990_v45  ;;  %v2652_v45 = vld [vmem:[%s3761_s7 + $0x60] sm:$0xff]  ;;  %v2654_v47 = vld [vmem:[%s3761_s7 + $0x70] sm:$0xff] }
 0x6d3   : > { %2998 = vmatprep.subr.bf16.mxu0 %v3183_v3 }
 0x6d5   : > { %2863 = vmatmul.mubr.msk.f32.vlgmr.msra.gmra.mrb[10].mxu0 %vm468_vm1, %v3349_v15 }
 0x6d6   : > { %2884 = vmatprep.mubr.msk.f32.mxu0 %vm3184_vm0, %v3185_v11  ;;  %3000 = vmatpush3.bf16.msra.mxu0 %v2999_v62 }
 0x6d7   : > { %3001 = vmatprep.subr.bf16.mxu0 %v3183_v3 }
 0x6d8   : > { %v1594_v49 = vpop.f32.mrb[14].mxu1 }
 0x6d9   : > { %v1595_v50 = vadd.f32 %v2623_v48, %v1594_v49  ;;  %v2875_v51 = vpop.f32.mrb[15].mxu1  ;;  %v2655_v49 = vld [vmem:[%s3761_s7 + $0x78] sm:$0xff] }
 0x6da   : > { %3003 = vmatpush3.bf16.msra.mxu0 %v3002_v0 }
 0x6db   : > { %2888 = vmatpush3.xpose.msk.msra.mxu1 %vm710_vm2, %v1595_v50  ;;  %2897 = vmatprep.subr.mxu0 %v3185_v11  ;;  %v3020_v50 = vpack.c.bf16 %v2655_v49, %v2654_v47 }
 0x6dc   : > { %2892 = vmatprep.subr.mxu1 %v3185_v11 }
 0x6dd   : > { %2885 = vmatmul.mubr.msk.f32.vlgmr.msra.gmra.mrb[12].mxu0 %vm468_vm1, %v3389_v30 }
 0x6de   : > { %2899 = vmatprep.mubr.msk.f32.mxu0 %vm3184_vm0, %v3185_v11  ;;  %2898 = vmatpush3.msra.mxu0 %v2636_v17 }
 0x6df   : > { %3010 = vmatprep.subr.bf16.mxu0 %v3183_v3 }
 0x7a0   : > { %v1355_v52 = vpop.f32.mrb[8].mxu0 }
 0x7a1   : > { %v3544_v53 = vadd.f32 %v1428_v46, %v1355_v52  ;;  %v2848_v54 = vpop.f32.mrb[9].mxu0  ;;  %v2653_v46 = vld [vmem:[%s3761_s7 + $0x68] sm:$0xff] }
 0x7a2   : > { %v3017_v48 = vpack.c.bf16 %v2653_v46, %v2652_v45 }
 0x7a8   : > { %v1511_v56 = vpop.f32.mrb[10].mxu0 }
 0x7a9   : > { %v1512_v57 = vadd.f32 %v2616_v55, %v1511_v56  ;;  %v2864_v58 = vpop.f32.mrb[11].mxu0 }
 0x7ab   : > { %2890 = vmatmul.mubr.msk.f32.vlgmr.msra.gmra.mrb[16].mxu1 %vm710_vm2, %v1512_v57 }
 0x7ac   : > { %2894 = vmatprep.mubr.msk.f32.mxu1 %vm3184_vm0, %v3185_v11 }
 0x7b0   : > { %v1677_v10 = vpop.f32.mrb[12].mxu0 }
 0x7b1   : > { %v2886_v13 = vpop.f32.mrb[13].mxu0  ;;  %v1678_v16 = vadd.f32 %v2630_v12, %v1677_v10 }
 0x7b3   : > { %2893 = vmatpush3.msra.mxu1 %v1678_v16 }
 0x7b4   : > { %3004 = vmatprep.subr.bf16.mxu1 %v3183_v3 }
 0x87e   : > { %v1753_v1 = vpop.f32.mrb[16].mxu1 }
 0x87f   : > { %v2891_v2 = vpop.f32.mrb[17].mxu1  ;;  %v1757_v4 = vsel %vm710_vm2, %v1753_v1, -inf }
 0x880   : > { %1758 = vmax.xlane.f32.xlu0 %v1757_v4 }
 0x90d   : > { %v1759_v5 = vpop.xlane.xlu0 %1758 }
 0x90e   : > { %v1760_v6 = vsub.f32 %v1753_v1, %v1759_v5 }
 0x910   : > { %v1761_v7 = vmul.f32 1.442695, %v1760_v6 }
 0x912   : > { %3079 = vpow2.f32 %v1761_v7 }
 0x91c   : > { %v3080_v8 = vpop.eup %3079 }
 0x91d   : > { %v1763_v9 = vsel %vm710_vm2, %v3080_v8, 0.0 }
 0x91e   : > { %1764 = vadd.xlane.f32.xlu1 %v1763_v9 }
 0x9ab   : > { %v1765_v18 = vpop.xlane.xlu1 %1764 }
 0x9ac   : > { %3081 = vrcp.f32 %v1765_v18 }
 0x9b6   : > { %v3082_v19 = vpop.eup %3081 }
 0x9b7   : > { %v1767_v20 = vmul.f32 %v3082_v19, %v3080_v8 }
 0x9b9   : > { %2895 = vmatmul.mubr.msk.f32.vlgmr.msra.gmra.mrb[18].mxu1 %vm710_vm2, %v1767_v20  ;;  %2634 = vst.msk [vmem:[%s3437_s16 + $0x10] sm:$0xff] %vm710_vm2, %v1767_v20 }
 0x9ba   : > { %2910 = vmatprep.mubr.msk.f32.mxu1 %vm3184_vm0, %v3185_v11  ;;  %3006 = vmatpush3.bf16.msra.mxu1 %v3005_v23 }
 0x9bb   : > { %3007 = vmatprep.subr.bf16.mxu1 %v3183_v3 }
 0x9be   : > { %3009 = vmatpush3.bf16.msra.mxu1 %v3008_v26 }
 0x9bf   : > { %3016 = vmatprep.subr.bf16.mxu1 %v3183_v3 }
 0x9c1   : > { %2911 = vmatmul.mubr.msk.f32.vlgmr.msra.gmra.mrb[20].mxu1 %vm468_vm1, %v3349_v15  ;;  %v2648_v15 = vld [vmem:[%s3759_s5 + $0x78] sm:$0xff] }
 0x9c2   : > { %2932 = vmatprep.mubr.msk.f32.mxu1 %vm3184_vm0, %v3185_v11  ;;  %v3014_v34 = vpack.c.bf16 %v2648_v15, %v2647_v31  ;;  %3018 = vmatpush3.bf16.msra.mxu1 %v3017_v48 }
 0x9c3   : > { %3019 = vmatprep.subr.bf16.mxu1 %v3183_v3 }
 0x9c6   : > { %3021 = vmatpush3.bf16.msra.mxu1 %v3020_v50 }
 0x9c7   : > { %2945 = vmatprep.subr.mxu1 %v3185_v11 }
 0x9c9   : > { %2933 = vmatmul.mubr.msk.f32.vlgmr.msra.gmra.mrb[22].mxu1 %vm468_vm1, %v3389_v30 }
 0x9ca   : > { %2947 = vmatprep.mubr.msk.f32.mxu1 %vm3184_vm0, %v3185_v11  ;;  %2946 = vmatpush3.msra.mxu1 %v2663_v60 }
 0xa8c   : > { %v1839_v32 = vpop.f32.mrb[18].mxu1 }
 0xa8d   : > { %v2896_v33 = vpop.f32.mrb[19].mxu1  ;;  %2900 = vmatmul.mubr.msk.f32.vlgmr.msra.gmra.mrb[14].mxu0 %vm710_vm2, %v1839_v32 }
 0xa8e   : > { %3012 = vmatpush3.bf16.msra.mxu0 %v3011_v29  ;;  %2921 = vmatprep.mubr.msk.f32.mxu0 %vm3184_vm0, %v3185_v11 }
 0xa8f   : > { %3013 = vmatprep.subr.bf16.mxu0 %v3183_v3 }
 0xa92   : > { %3015 = vmatpush3.bf16.msra.mxu0 %v3014_v34 }
 0xa93   : > { %2935 = vmatprep.subr.mxu0 %v3185_v11 }
 0xa94   : > { %v1998_v35 = vpop.f32.mrb[20].mxu1 }
 0xa95   : > { %2922 = vmatmul.mubr.msk.f32.vlgmr.msra.gmra.mrb[16].mxu0 %vm468_vm1, %v3347_v14  ;;  %v2912_v36 = vpop.f32.mrb[21].mxu1  ;;  %v1999_v44 = vadd.f32 %v2643_v41, %v1998_v35 }
 0xa96   : > { %2937 = vmatprep.mubr.msk.f32.mxu0 %vm3184_vm0, %v3185_v11 }
 0xa9c   : > { %v2164_v58 = vpop.f32.mrb[22].mxu1 }
 0xa9d   : > { %v2934_v30 = vpop.f32.mrb[23].mxu1 }
 0xb60   : > { %v1914_v37 = vpop.f32.mrb[14].mxu0 }
 0xb61   : > { %v3625_v38 = vadd.f32 %v1914_v37, %v3544_v53  ;;  %v2901_v39 = vpop.f32.mrb[15].mxu0 }
 0xb68   : > { %v2081_v42 = vpop.f32.mrb[16].mxu0 }
 0xb69   : > { %v2082_v14 = vadd.f32 %v2650_v40, %v2081_v42  ;;  %v2923_v43 = vpop.f32.mrb[17].mxu0 }
 0xb6b   : > { %2936 = vmatpush3.xpose.msk.msra.mxu0 %vm710_vm2, %v2082_v14 }
 0xb6c   : > { %2940 = vmatprep.subr.mxu0 %v3185_v11 }
 0xb6e   : > { %2938 = vmatmul.mubr.msk.f32.vlgmr.msra.gmra.mrb[18].mxu0 %vm710_vm2, %v1999_v44 }
 0xb6f   : > { %2942 = vmatprep.mubr.msk.f32.mxu0 %vm3184_vm0, %v3185_v11  ;;  %v2657_v11 = vld [vmem:[%s3762_s8 + $0x3] ss:$0 sm:$0xff] }
 0xb70   : > { %v2165_v59 = vadd.f32 %v2657_v11, %v2164_v58 }
 0xb72   : > { %2941 = vmatpush3.msra.mxu0 %v2165_v59 }
 0xc41   : > { %v2240_v51 = vpop.f32.mrb[18].mxu0 }
 0xc42   : > { %v2939_v52 = vpop.f32.mrb[19].mxu0  ;;  %v2244_v53 = vsel %vm710_vm2, %v2240_v51, -inf }
 0xc43   : > { %2245 = vmax.xlane.f32.xlu0 %v2244_v53 }
 0xcd0   : > { %v2246_v54 = vpop.xlane.xlu0 %2245 }
 0xcd1   : > { %v2247_v55 = vsub.f32 %v2240_v51, %v2246_v54 }
 0xcd3   : > { %v2248_v56 = vmul.f32 1.442695, %v2247_v55 }
 0xcd5   : > { %3083 = vpow2.f32 %v2248_v56 }
 0xcdf   : > { %v3084_v3 = vpop.eup %3083 }
 0xce0   : > { %v2250_v57 = vsel %vm710_vm2, %v3084_v3, 0.0 }
 0xce1   : > { %2251 = vadd.xlane.f32.xlu1 %v2250_v57 }
 0xd6e   : > { %v2252_v61 = vpop.xlane.xlu1 %2251 }
 0xd6f   : > { %3085 = vrcp.f32 %v2252_v61 }
 0xd79   : > { %v3086_v62 = vpop.eup %3085 }
 0xd7a   : > { %v2254_v63 = vmul.f32 %v3086_v62, %v3084_v3 }
 0xd7c   : > { %2943 = vmatmul.mubr.msk.f32.vlgmr.msra.gmra.mrb[20].mxu0 %vm710_vm2, %v2254_v63  ;;  %2661 = vst.msk [vmem:[%s3437_s16 + $0x18] sm:$0xff] %vm710_vm2, %v2254_v63  ;;  %s3093_s16 = scalar_lea.vmem %s3092_s0, 1024 }
 0xd7d   : > { %p3095_p1 = scmp.lt.s32.totalorder %s3093_s16, %s3087_s17 }
 0xd7f   : > { %p3096_p2 = por %p3095_p1, %p3094_p0 }
 0xd81   : > { %p3097_p3 = pnand %p3096_p2, %p3090_p13 }
 0xe4f   : > { %v2326_v0 = vpop.f32.mrb[20].mxu0 }
 0xe50   : > { %v2944_v1 = vpop.f32.mrb[21].mxu0  ;;  %2948 = vmatmul.mubr.msk.f32.vlgmr.msra.gmra.mrb[24].mxu1 %vm710_vm2, %v2326_v0 }
 0xe51   : > { %3100 = shalt.err (!%p3097_p3)
}
 0xe52   : > { %s3101_s20 = scalar_lea.hbm %s3675_s29, 512  ;;  %s3105_s18 = scalar_lea.hbm %s3766_s12, 1024 }
 0xe53   : > { %p3102_p4 = scmp.ne.s32.totalorder %s3675_s29, %s3101_s20  ;;  %p3106_p9 = scmp.lt.u32.totalorder %s3675_s29, %s3766_s12 }
 0xe54   : > { %p3107_p10 = scmp.lt.u32.totalorder %s3105_s18, %s3101_s20  ;;  %p3109_p12 = scmp.lt.u32.totalorder %s3101_s20, %s3675_s29 }
 0xe55   : > { %p3103_p7 = pnand %p3102_p4, %p3293_p5 }
 0xe56   : > { %p3108_p11 = por %p3107_p10, %p3106_p9 }
 0xe57   : > { %p3104_p8 = pneg %p3103_p7 }
 0xe58   : > { %p3110_p13 = por %p3109_p12, %p3108_p11 }
 0xe5a   : > { %p3111_p0 = pnand %p3110_p13, %p3104_p8 }
 0xe5c   : > { %3114 = shalt.err (!%p3111_p0)
}
 0xe5d   : > { %s3187_s17 = smov 128   ;;  %s3188_s16 = smov 8   ;;  %v2665_v4 = vld [vmem:[%s3764_s10] ss:$0 sm:$0xff] }
 0xe5e   : > { %s3780_s26 = scalar_lea.sflag [#allocation5], %s3421_s28  ;;  %s2569_s15 = sshll.u32 %s3421_s28, 3 }
 0xe5f   : > { %3023 = dma.vmem_to_hbm [thread:$0]  (%p3293_p5), %s3670_s19, 512, %s3675_s29, %s3780_s26, %s3187_s17, %s3187_s17, %s3188_s16  }
 0xe60   : > { %s2668_s18 = sshll.u32 %s3276_s25, 7  ;;  %s434_s0 = scalar_lea.vmem [#allocation2], %s2569_s15 }
 0xe61   : > { %s2434_s1 = sshll.u32 %s434_s0, 4  ;;  %s3710_s4 = scalar_lea.hbm %s3765_s11, %s2668_s18  ;;  %s3712_s1 = int_to_ptr.vmem [resolvable:$true] %s2434_s1 }
 0xe62   : > { %s2416_s19 = scalar_lea.sflag [#allocation3], %s3421_s28  ;;  %s3115_s25 = scalar_lea.vmem %s3712_s1, 128 }
 0xe63   : > { %p3116_p1 = scmp.ne.s32.totalorder %s3712_s1, %s3115_s25  ;;  %s3189_s29 = smov [#allocation2]  }
 0xe64   : > { %s3119_s17 = sshll.u32 %s3189_s29, 4  ;;  %s3120_s17 = int_to_ptr.vmem [resolvable:$false] %s3119_s17 }
 0xe65   : > { %p3117_p2 = pnand %p3116_p1, %p3293_p5  ;;  %s3121_s16 = scalar_lea.vmem %s3120_s17, 256 }
 0xe66   : > { %p3122_p4 = scmp.lt.s32.totalorder %s3712_s1, %s3120_s17  ;;  %p3123_p7 = scmp.lt.s32.totalorder %s3121_s16, %s3115_s25 }
 0xe67   : > { %p3118_p3 = pneg %p3117_p2 }
 0xe68   : > { %p3124_p8 = por %p3123_p7, %p3122_p4 }
 0xe6a   : > { %p3125_p9 = pnand %p3124_p8, %p3118_p3 }
 0xf23   : > { %v2401_v2 = vpop.f32.mrb[24].mxu1 }
 0xf24   : > { %v2405_v5 = vadd.f32 %v2401_v2, %v3625_v38  ;;  %v2949_v6 = vpop.f32.mrb[25].mxu1 }
 0xf26   : > { %v2413_v7 = vadd.f32 %v2665_v4, %v2405_v5 }
 0xf28   : > { %2414 = vst.msk [vmem:[%s434_s0] sm:$0xff] %vm468_vm1, %v2413_v7 }
 0xf29   : > { %3128 = shalt.err (!%p3125_p9)
}
 0xf2a   : > { %s3129_s2 = scalar_lea.hbm %s3710_s4, 128  ;;  %s3133_s26 = scalar_lea.hbm %s3765_s11, 256 }
 0xf2b   : > { %p3130_p10 = scmp.ne.s32.totalorder %s3710_s4, %s3129_s2  ;;  %p3134_p13 = scmp.lt.u32.totalorder %s3710_s4, %s3765_s11 }
 0xf2c   : > { %p3135_p0 = scmp.lt.u32.totalorder %s3133_s26, %s3129_s2  ;;  %p3137_p2 = scmp.lt.u32.totalorder %s3129_s2, %s3710_s4 }
 0xf2d   : > { %p3131_p11 = pnand %p3130_p10, %p3293_p5 }
 0xf2e   : > { %p3136_p1 = por %p3135_p0, %p3134_p13 }
 0xf2f   : > { %p3132_p12 = pneg %p3131_p11 }
 0xf30   : > { %p3138_p3 = por %p3137_p2, %p3136_p1 }
 0xf32   : > { %p3139_p4 = pnand %p3138_p3, %p3132_p12 }
 0xf34   : > { %3142 = shalt.err (!%p3139_p4)
}
 0xf35   : > { %3022 = dma.vmem_to_hbm [thread:$0]  (%p3293_p5), %s3712_s1, 128, %s3710_s4, %s2416_s19  }
 0xf36 PF: > { %p3033_p7 = scmp.ge.s32.totalorder %s3181_s24, 2  ;;  %s2462_s20 = sand.u32 1, %s3169_s21  }
 0xf37   : > { %s2463_s18 = scalar_lea.sflag [#allocation3], %s2462_s20 }
 0xf38   : > { %p3027_p8 = pnand %p3033_p7, %p3297_p6 }
 0xf3a   : > { %3160 = dma.done.wait (!%p3027_p8), %s2463_s18, 128  }
 0xf3b   : > { %3162 = vsyncadd (!%p3027_p8), %s2463_s18, 4294967168  ;;  %s2472_s0 = scalar_lea.sflag [#allocation5], %s2462_s20 }
 0xf3c   : > { %3164 = dma.done.wait (!%p3027_p8), %s2472_s0, 512  }
 0xf3d   : > { %3166 = vsyncadd (!%p3027_p8), %s2472_s0, 4294966784  ;;  %s3781_s13 = sld [smem:[#allocation8_spill]]  ;;  %p26_p5 = scmp.ge.s32.totalorder %s3280_s27, 4  }
 0xf3e   : > { %s3782_s21 = smov %s3173_s22  ;;  %s3783_s22 = smov %s3177_s23 }
 0xf3f   : > { %s3785_s24 = smov %s3280_s27  ;;  %28 = sbr.rel (!%p26_p5) target bundleno = 11 (0xb), region = 146 }
 0xf43   : > { %s3784_s23 = smov %s3781_s13 }
 0xf46   :  { %2477 = vsyncpa [#allocation3], 1 }
 0xf47   :  { %2479 = vsyncpa [#allocation3 + $0x1], 1 }
 0xf48   :  { %2480 = vsyncpa [#allocation5], 1 }
 0xf49   :  { %2482 = vsyncpa [#allocation5 + $0x1], 1 }

</bundles_post_ra>
